<compile_context>
chip_gen: v6e
topology: v6e:2x2x1
jax: 0.10.0
libtpu: 0.0.40
codegen_flags: <defaults>
</compile_context>

<pallas_src>
import functools

import numpy as np

import jax
import jax.numpy as jnp
from jax.experimental import pallas as pl
from jax.experimental.pallas import tpu as pltpu

EPS = 1e-5  # nn.BatchNorm2d default

# pltpu.roll follows np.roll semantics: result[i] = x[(i - shift) % n]
# (this is what JAX's own Pallas TPU op tests assert against).  Kept as a
# named constant so the tap-shift math is a one-line flip if a future jaxlib
# ever changes the convention.
_ROLL_MATCHES_NUMPY = True


# ---------------------------------------------------------------------------
# Kernel
# ---------------------------------------------------------------------------
def _residual_block_kernel(x_ref, m_ref, w1_ref, g1_ref, be1_ref,
                           w2_ref, g2_ref, be2_ref, o_ref, *, roll_amts):
    """All activations are lane-dense (C_pad, N*H*W) f32 slabs.

    roll_amts: static tuple of nine lane-roll amounts (one per 3x3 tap).
    m_ref:     (9, NHW) f32 0/1 halo masks (implements conv padding=1).
    w*_ref:    (9, Cp, Cp) per-tap weight blocks (Cout, Cin).
    """
    x = x_ref[...]                                            # (Cp, NHW) f32

    def conv(y, w_ref):
        # 3x3 conv, padding=1: nine accumulating (Cp,Cp)x(Cp,NHW) matmuls.
        # Each tap is built and consumed immediately (no im2col slab), keeping
        # vreg pressure low; on v7x the acc += dot(...) chain accumulates in
        # the MXU result buffer.
        acc = None
        for t, amt in enumerate(roll_amts):
            if amt == 0:                       # center tap: no shift, no halo
                tap = y
            else:                              # XLU lane roll + 0/1 halo mask
                tap = pltpu.roll(y, amt, 1) * m_ref[pl.ds(t, 1), :]
            part = jnp.dot(w_ref[t], tap, preferred_element_type=jnp.float32)
            acc = part if acc is None else acc + part
        return acc

    def bn(y, g_ref, b_ref):
        # Training-mode BatchNorm2d: biased stats over (N, H, W), single pass.
        # (One-pass variance is fine at this scale / tolerance; use a centered
        # two-pass formulation if the kernel is scaled up.)
        inv_n = 1.0 / y.shape[1]
        mean = jnp.sum(y, axis=1, keepdims=True) * inv_n
        var = jnp.sum(y * y, axis=1, keepdims=True) * inv_n - mean * mean
        scale = g_ref[...] * jax.lax.rsqrt(var + EPS)         # EUP rsqrt
        return y * scale + (b_ref[...] - mean * scale)        # one fused pass

    # conv1 -> bn1 -> relu   (conv bias omitted: cancelled by BN mean-subtract)
    y = jnp.maximum(bn(conv(x, w1_ref), g1_ref, be1_ref), 0.0)
    # conv2 -> bn2
    z = bn(conv(y, w2_ref), g2_ref, be2_ref)
    # residual add + relu; lane-dense (multiple-of-128) unmasked store
    o_ref[...] = jnp.maximum(z + x, 0.0).astype(o_ref.dtype)


# ---------------------------------------------------------------------------
# Wrapper
# ---------------------------------------------------------------------------
def residual_block(x_nchw, params):
    """x_nchw: (N, C, H, W) float32 -> (N, C, H, W) float32."""
    w1, b1, g1, be1, w2, b2, g2, be2 = params
    del b1, b2        # pre-BN conv bias cancels under training-mode BN
    N, C, H, W = x_nchw.shape
    NHW = N * H * W
    Cp = ((C + 7) // 8) * 8            # pad channels to a full sublane tile

    # Lane-dense slab layout (C_pad, N*H*W).
    # TODO(synk): in a real residual stack keep activations in this layout
    # end-to-end; here the NCHW<->slab relayout is unavoidable glue around the
    # NCHW test interface (~8 KiB each way at this size).
    x2 = jnp.transpose(x_nchw, (1, 0, 2, 3)).reshape(C, NHW)
    x2 = jnp.pad(x2, ((0, Cp - C), (0, 0)))

    def prep_w(w):
        # (3,3,Cin,Cout) HWIO -> (9, Cp_out, Cp_in): one (Cout,Cin) block/tap.
        wp = jnp.pad(w, ((0, 0), (0, 0), (0, Cp - C), (0, Cp - C)))
        return jnp.transpose(wp.reshape(9, Cp, Cp), (0, 2, 1))

    def col(v):
        # (C,) -> (Cp, 1); zero padding (incl. gamma) keeps padded channels 0.
        return jnp.pad(v, (0, Cp - C)).reshape(Cp, 1)

    wm1, wm2 = prep_w(w1), prep_w(w2)
    g1c, be1c, g2c, be2c = col(g1), col(be1), col(g2), col(be2)

    # Static halo masks (implements conv padding=1) + per-tap roll amounts,
    # built once on the host with numpy (no device ops, no in-kernel iota).
    pos = np.arange(NHW)
    hw = pos % (H * W)
    hh, ww = hw // W, hw % W
    masks = np.empty((9, NHW), np.float32)
    roll_amts = []
    for t in range(9):
        dh, dw = t // 3 - 1, t % 3 - 1
        masks[t] = ((hh + dh >= 0) & (hh + dh < H) &
                    (ww + dw >= 0) & (ww + dw < W)).astype(np.float32)
        s = dh * W + dw                        # want tap[p] = y[p + s]
        roll_amts.append(((-s) if _ROLL_MATCHES_NUMPY else s) % NHW)
    masks = jnp.asarray(masks)

    kernel = functools.partial(_residual_block_kernel,
                               roll_amts=tuple(roll_amts))

    def full(shape):
        nd = len(shape)
        return pl.BlockSpec(shape, lambda i, _nd=nd: (0,) * _nd)

    out2 = pl.pallas_call(
        kernel,
        out_shape=jax.ShapeDtypeStruct((Cp, NHW), x_nchw.dtype),
        grid_spec=pltpu.PrefetchScalarGridSpec(
            num_scalar_prefetch=0,
            grid=(1,),   # whole problem fits VMEM at this size (see TODO)
            in_specs=[
                full(x2.shape), full(masks.shape),
                full(wm1.shape), full(g1c.shape), full(be1c.shape),
                full(wm2.shape), full(g2c.shape), full(be2c.shape),
            ],
            out_specs=full((Cp, NHW)),
        ),
        compiler_params=pltpu.CompilerParams(
            dimension_semantics=("arbitrary",),
            vmem_limit_bytes=32 * 1024 * 1024,
        ),
    )(x2, masks, wm1, g1c, be1c, wm2, g2c, be2c)

    return out2[:C].reshape(C, N, H, W).transpose(1, 0, 2, 3)   # back to NCHW


# ---------------------------------------------------------------------------
# Pure-JAX reference of the PyTorch forward (training-mode BN, with conv bias)
# ---------------------------------------------------------------------------
def reference(x_nchw, params):
    w1, b1, g1, be1, w2, b2, g2, be2 = params

    def conv(x, w, b):
        y = jax.lax.conv_general_dilated(
            x, w, window_strides=(1, 1), padding="SAME",
            dimension_numbers=("NCHW", "HWIO", "NCHW"))
        return y + b.reshape(1, -1, 1, 1)

    def bn(x, g, be):
        mean = jnp.mean(x, axis=(0, 2, 3), keepdims=True)
        var = jnp.mean((x - mean) ** 2, axis=(0, 2, 3), keepdims=True)
        return ((x - mean) / jnp.sqrt(var + EPS)) * g.reshape(1, -1, 1, 1) \
               + be.reshape(1, -1, 1, 1)

    y = jax.nn.relu(bn(conv(x_nchw, w1, b1), g1, be1))
    z = bn(conv(y, w2, b2), g2, be2)
    return jax.nn.relu(z + x_nchw)


if __name__ == "__main__":
    key = jax.random.PRNGKey(0)
    N, C, H, W = 2, 4, 16, 16
    ks = jax.random.split(key, 5)

    x = jax.random.normal(ks[0], (N, C, H, W), jnp.float32)

    # deterministic parameter init (emulating nn.Conv2d kaiming-uniform bounds)
    fan_in = C * 3 * 3
    bound = 1.0 / (fan_in ** 0.5)
    w1 = jax.random.uniform(ks[1], (3, 3, C, C), jnp.float32, -bound, bound)
    b1 = jax.random.uniform(ks[2], (C,), jnp.float32, -bound, bound)
    w2 = jax.random.uniform(ks[3], (3, 3, C, C), jnp.float32, -bound, bound)
    b2 = jax.random.uniform(ks[4], (C,), jnp.float32, -bound, bound)
    # nn.BatchNorm2d default affine init: gamma=1, beta=0
    g1 = jnp.ones((C,), jnp.float32)
    be1 = jnp.zeros((C,), jnp.float32)
    g2 = jnp.ones((C,), jnp.float32)
    be2 = jnp.zeros((C,), jnp.float32)

    params = (w1, b1, g1, be1, w2, b2, g2, be2)

    out = jax.block_until_ready(residual_block(x, params))
    ref = reference(x, params)

    assert out.shape == (N, C, H, W)
    max_err = float(jnp.max(jnp.abs(out - ref)))
    assert jnp.allclose(out, ref, atol=1e-3, rtol=1e-3), f"max_err={max_err}"
    print("KERNEL_OK")
</pallas_src>

<mosaic_0001>
module attributes {stable_mosaic.version = 11 : i64} {
  func.func @_residual_block_kernel(%arg0: i32, %arg1: memref<8x512xf32, #tpu.memory_space<vmem>>, %arg2: memref<9x512xf32, #tpu.memory_space<vmem>>, %arg3: memref<9x8x8xf32, #tpu.memory_space<vmem>>, %arg4: memref<8x1xf32, #tpu.memory_space<vmem>>, %arg5: memref<8x1xf32, #tpu.memory_space<vmem>>, %arg6: memref<9x8x8xf32, #tpu.memory_space<vmem>>, %arg7: memref<8x1xf32, #tpu.memory_space<vmem>>, %arg8: memref<8x1xf32, #tpu.memory_space<vmem>>, %arg9: memref<8x512xf32, #tpu.memory_space<vmem>>) attributes {dimension_semantics = [#tpu.dimension_semantics<arbitrary>], iteration_bounds = array<i64: 1>, scalar_prefetch = 0 : i64, scratch_operands = 0 : i64, tpu.core_type = #tpu.core_type<tc>, window_params = [{pipeline_mode = #tpu.pipeline_mode<synchronous>, transform_indices = @transform_0, window_bounds = array<i64: 8, 512>}, {pipeline_mode = #tpu.pipeline_mode<synchronous>, transform_indices = @transform_1, window_bounds = array<i64: 9, 512>}, {pipeline_mode = #tpu.pipeline_mode<synchronous>, transform_indices = @transform_2, window_bounds = array<i64: 9, 8, 8>}, {pipeline_mode = #tpu.pipeline_mode<synchronous>, transform_indices = @transform_3, window_bounds = array<i64: 8, 1>}, {pipeline_mode = #tpu.pipeline_mode<synchronous>, transform_indices = @transform_4, window_bounds = array<i64: 8, 1>}, {pipeline_mode = #tpu.pipeline_mode<synchronous>, transform_indices = @transform_5, window_bounds = array<i64: 9, 8, 8>}, {pipeline_mode = #tpu.pipeline_mode<synchronous>, transform_indices = @transform_6, window_bounds = array<i64: 8, 1>}, {pipeline_mode = #tpu.pipeline_mode<synchronous>, transform_indices = @transform_7, window_bounds = array<i64: 8, 1>}, {pipeline_mode = #tpu.pipeline_mode<synchronous>, transform_indices = @transform_8, window_bounds = array<i64: 8, 512>}]} {
    %c0 = arith.constant 0 : index
    %c0_0 = arith.constant 0 : index
    %0 = vector.load %arg1[%c0, %c0_0] : memref<8x512xf32, #tpu.memory_space<vmem>>, vector<8x512xf32>
    %c17_i32 = arith.constant 17 : i32
    %1 = tpu.dynamic_rotate %0 by %c17_i32 dim 1 : vector<8x512xf32>, i32 -> vector<8x512xf32>
    %c0_1 = arith.constant 0 : index
    %c0_2 = arith.constant 0 : index
    %2 = vector.load %arg2[%c0_1, %c0_2] : memref<9x512xf32, #tpu.memory_space<vmem>>, vector<1x512xf32>
    %3 = vector.broadcast %2 : vector<1x512xf32> to vector<8x512xf32>
    %4 = arith.mulf %1, %3 : vector<8x512xf32>
    %c0_3 = arith.constant 0 : index
    %c0_4 = arith.constant 0 : index
    %c0_5 = arith.constant 0 : index
    %5 = vector.load %arg3[%c0_3, %c0_4, %c0_5] : memref<9x8x8xf32, #tpu.memory_space<vmem>>, vector<1x8x8xf32>
    %6 = vector.shape_cast %5 : vector<1x8x8xf32> to vector<8x8xf32>
    %cst = arith.constant dense<0.000000e+00> : vector<8x512xf32>
    %7 = tpu.matmul %6, %4, %cst {dimension_numbers = #tpu.dot_dimension_numbers<[1], [0], [0], [1], [0, 0, 1, 1], [], []>} : vector<8x8xf32>, vector<8x512xf32>, vector<8x512xf32> -> vector<8x512xf32>
    %c16_i32 = arith.constant 16 : i32
    %8 = tpu.dynamic_rotate %0 by %c16_i32 dim 1 : vector<8x512xf32>, i32 -> vector<8x512xf32>
    %c1 = arith.constant 1 : index
    %c0_6 = arith.constant 0 : index
    %9 = vector.load %arg2[%c1, %c0_6] : memref<9x512xf32, #tpu.memory_space<vmem>>, vector<1x512xf32>
    %10 = vector.broadcast %9 : vector<1x512xf32> to vector<8x512xf32>
    %11 = arith.mulf %8, %10 : vector<8x512xf32>
    %c1_7 = arith.constant 1 : index
    %c0_8 = arith.constant 0 : index
    %c0_9 = arith.constant 0 : index
    %12 = vector.load %arg3[%c1_7, %c0_8, %c0_9] : memref<9x8x8xf32, #tpu.memory_space<vmem>>, vector<1x8x8xf32>
    %13 = vector.shape_cast %12 : vector<1x8x8xf32> to vector<8x8xf32>
    %cst_10 = arith.constant dense<0.000000e+00> : vector<8x512xf32>
    %14 = tpu.matmul %13, %11, %cst_10 {dimension_numbers = #tpu.dot_dimension_numbers<[1], [0], [0], [1], [0, 0, 1, 1], [], []>} : vector<8x8xf32>, vector<8x512xf32>, vector<8x512xf32> -> vector<8x512xf32>
    %15 = arith.addf %7, %14 : vector<8x512xf32>
    %c15_i32 = arith.constant 15 : i32
    %16 = tpu.dynamic_rotate %0 by %c15_i32 dim 1 : vector<8x512xf32>, i32 -> vector<8x512xf32>
    %c2 = arith.constant 2 : index
    %c0_11 = arith.constant 0 : index
    %17 = vector.load %arg2[%c2, %c0_11] : memref<9x512xf32, #tpu.memory_space<vmem>>, vector<1x512xf32>
    %18 = vector.broadcast %17 : vector<1x512xf32> to vector<8x512xf32>
    %19 = arith.mulf %16, %18 : vector<8x512xf32>
    %c2_12 = arith.constant 2 : index
    %c0_13 = arith.constant 0 : index
    %c0_14 = arith.constant 0 : index
    %20 = vector.load %arg3[%c2_12, %c0_13, %c0_14] : memref<9x8x8xf32, #tpu.memory_space<vmem>>, vector<1x8x8xf32>
    %21 = vector.shape_cast %20 : vector<1x8x8xf32> to vector<8x8xf32>
    %cst_15 = arith.constant dense<0.000000e+00> : vector<8x512xf32>
    %22 = tpu.matmul %21, %19, %cst_15 {dimension_numbers = #tpu.dot_dimension_numbers<[1], [0], [0], [1], [0, 0, 1, 1], [], []>} : vector<8x8xf32>, vector<8x512xf32>, vector<8x512xf32> -> vector<8x512xf32>
    %23 = arith.addf %15, %22 : vector<8x512xf32>
    %c1_i32 = arith.constant 1 : i32
    %24 = tpu.dynamic_rotate %0 by %c1_i32 dim 1 : vector<8x512xf32>, i32 -> vector<8x512xf32>
    %c3 = arith.constant 3 : index
    %c0_16 = arith.constant 0 : index
    %25 = vector.load %arg2[%c3, %c0_16] : memref<9x512xf32, #tpu.memory_space<vmem>>, vector<1x512xf32>
    %26 = vector.broadcast %25 : vector<1x512xf32> to vector<8x512xf32>
    %27 = arith.mulf %24, %26 : vector<8x512xf32>
    %c3_17 = arith.constant 3 : index
    %c0_18 = arith.constant 0 : index
    %c0_19 = arith.constant 0 : index
    %28 = vector.load %arg3[%c3_17, %c0_18, %c0_19] : memref<9x8x8xf32, #tpu.memory_space<vmem>>, vector<1x8x8xf32>
    %29 = vector.shape_cast %28 : vector<1x8x8xf32> to vector<8x8xf32>
    %cst_20 = arith.constant dense<0.000000e+00> : vector<8x512xf32>
    %30 = tpu.matmul %29, %27, %cst_20 {dimension_numbers = #tpu.dot_dimension_numbers<[1], [0], [0], [1], [0, 0, 1, 1], [], []>} : vector<8x8xf32>, vector<8x512xf32>, vector<8x512xf32> -> vector<8x512xf32>
    %31 = arith.addf %23, %30 : vector<8x512xf32>
    %c4 = arith.constant 4 : index
    %c0_21 = arith.constant 0 : index
    %c0_22 = arith.constant 0 : index
    %32 = vector.load %arg3[%c4, %c0_21, %c0_22] : memref<9x8x8xf32, #tpu.memory_space<vmem>>, vector<1x8x8xf32>
    %33 = vector.shape_cast %32 : vector<1x8x8xf32> to vector<8x8xf32>
    %cst_23 = arith.constant dense<0.000000e+00> : vector<8x512xf32>
    %34 = tpu.matmul %33, %0, %cst_23 {dimension_numbers = #tpu.dot_dimension_numbers<[1], [0], [0], [1], [0, 0, 1, 1], [], []>} : vector<8x8xf32>, vector<8x512xf32>, vector<8x512xf32> -> vector<8x512xf32>
    %35 = arith.addf %31, %34 : vector<8x512xf32>
    %c511_i32 = arith.constant 511 : i32
    %36 = tpu.dynamic_rotate %0 by %c511_i32 dim 1 : vector<8x512xf32>, i32 -> vector<8x512xf32>
    %c5 = arith.constant 5 : index
    %c0_24 = arith.constant 0 : index
    %37 = vector.load %arg2[%c5, %c0_24] : memref<9x512xf32, #tpu.memory_space<vmem>>, vector<1x512xf32>
    %38 = vector.broadcast %37 : vector<1x512xf32> to vector<8x512xf32>
    %39 = arith.mulf %36, %38 : vector<8x512xf32>
    %c5_25 = arith.constant 5 : index
    %c0_26 = arith.constant 0 : index
    %c0_27 = arith.constant 0 : index
    %40 = vector.load %arg3[%c5_25, %c0_26, %c0_27] : memref<9x8x8xf32, #tpu.memory_space<vmem>>, vector<1x8x8xf32>
    %41 = vector.shape_cast %40 : vector<1x8x8xf32> to vector<8x8xf32>
    %cst_28 = arith.constant dense<0.000000e+00> : vector<8x512xf32>
    %42 = tpu.matmul %41, %39, %cst_28 {dimension_numbers = #tpu.dot_dimension_numbers<[1], [0], [0], [1], [0, 0, 1, 1], [], []>} : vector<8x8xf32>, vector<8x512xf32>, vector<8x512xf32> -> vector<8x512xf32>
    %43 = arith.addf %35, %42 : vector<8x512xf32>
    %c497_i32 = arith.constant 497 : i32
    %44 = tpu.dynamic_rotate %0 by %c497_i32 dim 1 : vector<8x512xf32>, i32 -> vector<8x512xf32>
    %c6 = arith.constant 6 : index
    %c0_29 = arith.constant 0 : index
    %45 = vector.load %arg2[%c6, %c0_29] : memref<9x512xf32, #tpu.memory_space<vmem>>, vector<1x512xf32>
    %46 = vector.broadcast %45 : vector<1x512xf32> to vector<8x512xf32>
    %47 = arith.mulf %44, %46 : vector<8x512xf32>
    %c6_30 = arith.constant 6 : index
    %c0_31 = arith.constant 0 : index
    %c0_32 = arith.constant 0 : index
    %48 = vector.load %arg3[%c6_30, %c0_31, %c0_32] : memref<9x8x8xf32, #tpu.memory_space<vmem>>, vector<1x8x8xf32>
    %49 = vector.shape_cast %48 : vector<1x8x8xf32> to vector<8x8xf32>
    %cst_33 = arith.constant dense<0.000000e+00> : vector<8x512xf32>
    %50 = tpu.matmul %49, %47, %cst_33 {dimension_numbers = #tpu.dot_dimension_numbers<[1], [0], [0], [1], [0, 0, 1, 1], [], []>} : vector<8x8xf32>, vector<8x512xf32>, vector<8x512xf32> -> vector<8x512xf32>
    %51 = arith.addf %43, %50 : vector<8x512xf32>
    %c496_i32 = arith.constant 496 : i32
    %52 = tpu.dynamic_rotate %0 by %c496_i32 dim 1 : vector<8x512xf32>, i32 -> vector<8x512xf32>
    %c7 = arith.constant 7 : index
    %c0_34 = arith.constant 0 : index
    %53 = vector.load %arg2[%c7, %c0_34] : memref<9x512xf32, #tpu.memory_space<vmem>>, vector<1x512xf32>
    %54 = vector.broadcast %53 : vector<1x512xf32> to vector<8x512xf32>
    %55 = arith.mulf %52, %54 : vector<8x512xf32>
    %c7_35 = arith.constant 7 : index
    %c0_36 = arith.constant 0 : index
    %c0_37 = arith.constant 0 : index
    %56 = vector.load %arg3[%c7_35, %c0_36, %c0_37] : memref<9x8x8xf32, #tpu.memory_space<vmem>>, vector<1x8x8xf32>
    %57 = vector.shape_cast %56 : vector<1x8x8xf32> to vector<8x8xf32>
    %cst_38 = arith.constant dense<0.000000e+00> : vector<8x512xf32>
    %58 = tpu.matmul %57, %55, %cst_38 {dimension_numbers = #tpu.dot_dimension_numbers<[1], [0], [0], [1], [0, 0, 1, 1], [], []>} : vector<8x8xf32>, vector<8x512xf32>, vector<8x512xf32> -> vector<8x512xf32>
    %59 = arith.addf %51, %58 : vector<8x512xf32>
    %c495_i32 = arith.constant 495 : i32
    %60 = tpu.dynamic_rotate %0 by %c495_i32 dim 1 : vector<8x512xf32>, i32 -> vector<8x512xf32>
    %c8 = arith.constant 8 : index
    %c0_39 = arith.constant 0 : index
    %61 = vector.load %arg2[%c8, %c0_39] : memref<9x512xf32, #tpu.memory_space<vmem>>, vector<1x512xf32>
    %62 = vector.broadcast %61 : vector<1x512xf32> to vector<8x512xf32>
    %63 = arith.mulf %60, %62 : vector<8x512xf32>
    %c8_40 = arith.constant 8 : index
    %c0_41 = arith.constant 0 : index
    %c0_42 = arith.constant 0 : index
    %64 = vector.load %arg3[%c8_40, %c0_41, %c0_42] : memref<9x8x8xf32, #tpu.memory_space<vmem>>, vector<1x8x8xf32>
    %65 = vector.shape_cast %64 : vector<1x8x8xf32> to vector<8x8xf32>
    %cst_43 = arith.constant dense<0.000000e+00> : vector<8x512xf32>
    %66 = tpu.matmul %65, %63, %cst_43 {dimension_numbers = #tpu.dot_dimension_numbers<[1], [0], [0], [1], [0, 0, 1, 1], [], []>} : vector<8x8xf32>, vector<8x512xf32>, vector<8x512xf32> -> vector<8x512xf32>
    %67 = arith.addf %59, %66 : vector<8x512xf32>
    %cst_44 = arith.constant dense<0.000000e+00> : vector<8xf32>
    %68 = vector.multi_reduction <add>, %67, %cst_44 [1] : vector<8x512xf32> to vector<8xf32>
    %69 = vector.shape_cast %68 : vector<8xf32> to vector<8x1xf32>
    %cst_45 = arith.constant 0.001953125 : f32
    %70 = vector.broadcast %cst_45 : f32 to vector<8x1xf32>
    %71 = arith.mulf %69, %70 : vector<8x1xf32>
    %72 = arith.mulf %67, %67 : vector<8x512xf32>
    %cst_46 = arith.constant dense<0.000000e+00> : vector<8xf32>
    %73 = vector.multi_reduction <add>, %72, %cst_46 [1] : vector<8x512xf32> to vector<8xf32>
    %74 = vector.shape_cast %73 : vector<8xf32> to vector<8x1xf32>
    %cst_47 = arith.constant 0.001953125 : f32
    %75 = vector.broadcast %cst_47 : f32 to vector<8x1xf32>
    %76 = arith.mulf %74, %75 : vector<8x1xf32>
    %77 = arith.mulf %71, %71 : vector<8x1xf32>
    %78 = arith.subf %76, %77 : vector<8x1xf32>
    %c0_48 = arith.constant 0 : index
    %c0_49 = arith.constant 0 : index
    %79 = vector.load %arg4[%c0_48, %c0_49] : memref<8x1xf32, #tpu.memory_space<vmem>>, vector<8x1xf32>
    %cst_50 = arith.constant 9.99999974E-6 : f32
    %80 = vector.broadcast %cst_50 : f32 to vector<8x1xf32>
    %81 = arith.addf %78, %80 : vector<8x1xf32>
    %82 = math.rsqrt %81 : vector<8x1xf32>
    %83 = arith.mulf %79, %82 : vector<8x1xf32>
    %84 = vector.broadcast %83 : vector<8x1xf32> to vector<8x512xf32>
    %85 = arith.mulf %67, %84 : vector<8x512xf32>
    %c0_51 = arith.constant 0 : index
    %c0_52 = arith.constant 0 : index
    %86 = vector.load %arg5[%c0_51, %c0_52] : memref<8x1xf32, #tpu.memory_space<vmem>>, vector<8x1xf32>
    %87 = arith.mulf %71, %83 : vector<8x1xf32>
    %88 = arith.subf %86, %87 : vector<8x1xf32>
    %89 = vector.broadcast %88 : vector<8x1xf32> to vector<8x512xf32>
    %90 = arith.addf %85, %89 : vector<8x512xf32>
    %cst_53 = arith.constant 0.000000e+00 : f32
    %91 = vector.broadcast %cst_53 : f32 to vector<8x512xf32>
    %92 = arith.maximumf %90, %91 : vector<8x512xf32>
    %c17_i32_54 = arith.constant 17 : i32
    %93 = tpu.dynamic_rotate %92 by %c17_i32_54 dim 1 : vector<8x512xf32>, i32 -> vector<8x512xf32>
    %c0_55 = arith.constant 0 : index
    %c0_56 = arith.constant 0 : index
    %94 = vector.load %arg2[%c0_55, %c0_56] : memref<9x512xf32, #tpu.memory_space<vmem>>, vector<1x512xf32>
    %95 = vector.broadcast %94 : vector<1x512xf32> to vector<8x512xf32>
    %96 = arith.mulf %93, %95 : vector<8x512xf32>
    %c0_57 = arith.constant 0 : index
    %c0_58 = arith.constant 0 : index
    %c0_59 = arith.constant 0 : index
    %97 = vector.load %arg6[%c0_57, %c0_58, %c0_59] : memref<9x8x8xf32, #tpu.memory_space<vmem>>, vector<1x8x8xf32>
    %98 = vector.shape_cast %97 : vector<1x8x8xf32> to vector<8x8xf32>
    %cst_60 = arith.constant dense<0.000000e+00> : vector<8x512xf32>
    %99 = tpu.matmul %98, %96, %cst_60 {dimension_numbers = #tpu.dot_dimension_numbers<[1], [0], [0], [1], [0, 0, 1, 1], [], []>} : vector<8x8xf32>, vector<8x512xf32>, vector<8x512xf32> -> vector<8x512xf32>
    %c16_i32_61 = arith.constant 16 : i32
    %100 = tpu.dynamic_rotate %92 by %c16_i32_61 dim 1 : vector<8x512xf32>, i32 -> vector<8x512xf32>
    %c1_62 = arith.constant 1 : index
    %c0_63 = arith.constant 0 : index
    %101 = vector.load %arg2[%c1_62, %c0_63] : memref<9x512xf32, #tpu.memory_space<vmem>>, vector<1x512xf32>
    %102 = vector.broadcast %101 : vector<1x512xf32> to vector<8x512xf32>
    %103 = arith.mulf %100, %102 : vector<8x512xf32>
    %c1_64 = arith.constant 1 : index
    %c0_65 = arith.constant 0 : index
    %c0_66 = arith.constant 0 : index
    %104 = vector.load %arg6[%c1_64, %c0_65, %c0_66] : memref<9x8x8xf32, #tpu.memory_space<vmem>>, vector<1x8x8xf32>
    %105 = vector.shape_cast %104 : vector<1x8x8xf32> to vector<8x8xf32>
    %cst_67 = arith.constant dense<0.000000e+00> : vector<8x512xf32>
    %106 = tpu.matmul %105, %103, %cst_67 {dimension_numbers = #tpu.dot_dimension_numbers<[1], [0], [0], [1], [0, 0, 1, 1], [], []>} : vector<8x8xf32>, vector<8x512xf32>, vector<8x512xf32> -> vector<8x512xf32>
    %107 = arith.addf %99, %106 : vector<8x512xf32>
    %c15_i32_68 = arith.constant 15 : i32
    %108 = tpu.dynamic_rotate %92 by %c15_i32_68 dim 1 : vector<8x512xf32>, i32 -> vector<8x512xf32>
    %c2_69 = arith.constant 2 : index
    %c0_70 = arith.constant 0 : index
    %109 = vector.load %arg2[%c2_69, %c0_70] : memref<9x512xf32, #tpu.memory_space<vmem>>, vector<1x512xf32>
    %110 = vector.broadcast %109 : vector<1x512xf32> to vector<8x512xf32>
    %111 = arith.mulf %108, %110 : vector<8x512xf32>
    %c2_71 = arith.constant 2 : index
    %c0_72 = arith.constant 0 : index
    %c0_73 = arith.constant 0 : index
    %112 = vector.load %arg6[%c2_71, %c0_72, %c0_73] : memref<9x8x8xf32, #tpu.memory_space<vmem>>, vector<1x8x8xf32>
    %113 = vector.shape_cast %112 : vector<1x8x8xf32> to vector<8x8xf32>
    %cst_74 = arith.constant dense<0.000000e+00> : vector<8x512xf32>
    %114 = tpu.matmul %113, %111, %cst_74 {dimension_numbers = #tpu.dot_dimension_numbers<[1], [0], [0], [1], [0, 0, 1, 1], [], []>} : vector<8x8xf32>, vector<8x512xf32>, vector<8x512xf32> -> vector<8x512xf32>
    %115 = arith.addf %107, %114 : vector<8x512xf32>
    %c1_i32_75 = arith.constant 1 : i32
    %116 = tpu.dynamic_rotate %92 by %c1_i32_75 dim 1 : vector<8x512xf32>, i32 -> vector<8x512xf32>
    %c3_76 = arith.constant 3 : index
    %c0_77 = arith.constant 0 : index
    %117 = vector.load %arg2[%c3_76, %c0_77] : memref<9x512xf32, #tpu.memory_space<vmem>>, vector<1x512xf32>
    %118 = vector.broadcast %117 : vector<1x512xf32> to vector<8x512xf32>
    %119 = arith.mulf %116, %118 : vector<8x512xf32>
    %c3_78 = arith.constant 3 : index
    %c0_79 = arith.constant 0 : index
    %c0_80 = arith.constant 0 : index
    %120 = vector.load %arg6[%c3_78, %c0_79, %c0_80] : memref<9x8x8xf32, #tpu.memory_space<vmem>>, vector<1x8x8xf32>
    %121 = vector.shape_cast %120 : vector<1x8x8xf32> to vector<8x8xf32>
    %cst_81 = arith.constant dense<0.000000e+00> : vector<8x512xf32>
    %122 = tpu.matmul %121, %119, %cst_81 {dimension_numbers = #tpu.dot_dimension_numbers<[1], [0], [0], [1], [0, 0, 1, 1], [], []>} : vector<8x8xf32>, vector<8x512xf32>, vector<8x512xf32> -> vector<8x512xf32>
    %123 = arith.addf %115, %122 : vector<8x512xf32>
    %c4_82 = arith.constant 4 : index
    %c0_83 = arith.constant 0 : index
    %c0_84 = arith.constant 0 : index
    %124 = vector.load %arg6[%c4_82, %c0_83, %c0_84] : memref<9x8x8xf32, #tpu.memory_space<vmem>>, vector<1x8x8xf32>
    %125 = vector.shape_cast %124 : vector<1x8x8xf32> to vector<8x8xf32>
    %cst_85 = arith.constant dense<0.000000e+00> : vector<8x512xf32>
    %126 = tpu.matmul %125, %92, %cst_85 {dimension_numbers = #tpu.dot_dimension_numbers<[1], [0], [0], [1], [0, 0, 1, 1], [], []>} : vector<8x8xf32>, vector<8x512xf32>, vector<8x512xf32> -> vector<8x512xf32>
    %127 = arith.addf %123, %126 : vector<8x512xf32>
    %c511_i32_86 = arith.constant 511 : i32
    %128 = tpu.dynamic_rotate %92 by %c511_i32_86 dim 1 : vector<8x512xf32>, i32 -> vector<8x512xf32>
    %c5_87 = arith.constant 5 : index
    %c0_88 = arith.constant 0 : index
    %129 = vector.load %arg2[%c5_87, %c0_88] : memref<9x512xf32, #tpu.memory_space<vmem>>, vector<1x512xf32>
    %130 = vector.broadcast %129 : vector<1x512xf32> to vector<8x512xf32>
    %131 = arith.mulf %128, %130 : vector<8x512xf32>
    %c5_89 = arith.constant 5 : index
    %c0_90 = arith.constant 0 : index
    %c0_91 = arith.constant 0 : index
    %132 = vector.load %arg6[%c5_89, %c0_90, %c0_91] : memref<9x8x8xf32, #tpu.memory_space<vmem>>, vector<1x8x8xf32>
    %133 = vector.shape_cast %132 : vector<1x8x8xf32> to vector<8x8xf32>
    %cst_92 = arith.constant dense<0.000000e+00> : vector<8x512xf32>
    %134 = tpu.matmul %133, %131, %cst_92 {dimension_numbers = #tpu.dot_dimension_numbers<[1], [0], [0], [1], [0, 0, 1, 1], [], []>} : vector<8x8xf32>, vector<8x512xf32>, vector<8x512xf32> -> vector<8x512xf32>
    %135 = arith.addf %127, %134 : vector<8x512xf32>
    %c497_i32_93 = arith.constant 497 : i32
    %136 = tpu.dynamic_rotate %92 by %c497_i32_93 dim 1 : vector<8x512xf32>, i32 -> vector<8x512xf32>
    %c6_94 = arith.constant 6 : index
    %c0_95 = arith.constant 0 : index
    %137 = vector.load %arg2[%c6_94, %c0_95] : memref<9x512xf32, #tpu.memory_space<vmem>>, vector<1x512xf32>
    %138 = vector.broadcast %137 : vector<1x512xf32> to vector<8x512xf32>
    %139 = arith.mulf %136, %138 : vector<8x512xf32>
    %c6_96 = arith.constant 6 : index
    %c0_97 = arith.constant 0 : index
    %c0_98 = arith.constant 0 : index
    %140 = vector.load %arg6[%c6_96, %c0_97, %c0_98] : memref<9x8x8xf32, #tpu.memory_space<vmem>>, vector<1x8x8xf32>
    %141 = vector.shape_cast %140 : vector<1x8x8xf32> to vector<8x8xf32>
    %cst_99 = arith.constant dense<0.000000e+00> : vector<8x512xf32>
    %142 = tpu.matmul %141, %139, %cst_99 {dimension_numbers = #tpu.dot_dimension_numbers<[1], [0], [0], [1], [0, 0, 1, 1], [], []>} : vector<8x8xf32>, vector<8x512xf32>, vector<8x512xf32> -> vector<8x512xf32>
    %143 = arith.addf %135, %142 : vector<8x512xf32>
    %c496_i32_100 = arith.constant 496 : i32
    %144 = tpu.dynamic_rotate %92 by %c496_i32_100 dim 1 : vector<8x512xf32>, i32 -> vector<8x512xf32>
    %c7_101 = arith.constant 7 : index
    %c0_102 = arith.constant 0 : index
    %145 = vector.load %arg2[%c7_101, %c0_102] : memref<9x512xf32, #tpu.memory_space<vmem>>, vector<1x512xf32>
    %146 = vector.broadcast %145 : vector<1x512xf32> to vector<8x512xf32>
    %147 = arith.mulf %144, %146 : vector<8x512xf32>
    %c7_103 = arith.constant 7 : index
    %c0_104 = arith.constant 0 : index
    %c0_105 = arith.constant 0 : index
    %148 = vector.load %arg6[%c7_103, %c0_104, %c0_105] : memref<9x8x8xf32, #tpu.memory_space<vmem>>, vector<1x8x8xf32>
    %149 = vector.shape_cast %148 : vector<1x8x8xf32> to vector<8x8xf32>
    %cst_106 = arith.constant dense<0.000000e+00> : vector<8x512xf32>
    %150 = tpu.matmul %149, %147, %cst_106 {dimension_numbers = #tpu.dot_dimension_numbers<[1], [0], [0], [1], [0, 0, 1, 1], [], []>} : vector<8x8xf32>, vector<8x512xf32>, vector<8x512xf32> -> vector<8x512xf32>
    %151 = arith.addf %143, %150 : vector<8x512xf32>
    %c495_i32_107 = arith.constant 495 : i32
    %152 = tpu.dynamic_rotate %92 by %c495_i32_107 dim 1 : vector<8x512xf32>, i32 -> vector<8x512xf32>
    %c8_108 = arith.constant 8 : index
    %c0_109 = arith.constant 0 : index
    %153 = vector.load %arg2[%c8_108, %c0_109] : memref<9x512xf32, #tpu.memory_space<vmem>>, vector<1x512xf32>
    %154 = vector.broadcast %153 : vector<1x512xf32> to vector<8x512xf32>
    %155 = arith.mulf %152, %154 : vector<8x512xf32>
    %c8_110 = arith.constant 8 : index
    %c0_111 = arith.constant 0 : index
    %c0_112 = arith.constant 0 : index
    %156 = vector.load %arg6[%c8_110, %c0_111, %c0_112] : memref<9x8x8xf32, #tpu.memory_space<vmem>>, vector<1x8x8xf32>
    %157 = vector.shape_cast %156 : vector<1x8x8xf32> to vector<8x8xf32>
    %cst_113 = arith.constant dense<0.000000e+00> : vector<8x512xf32>
    %158 = tpu.matmul %157, %155, %cst_113 {dimension_numbers = #tpu.dot_dimension_numbers<[1], [0], [0], [1], [0, 0, 1, 1], [], []>} : vector<8x8xf32>, vector<8x512xf32>, vector<8x512xf32> -> vector<8x512xf32>
    %159 = arith.addf %151, %158 : vector<8x512xf32>
    %cst_114 = arith.constant dense<0.000000e+00> : vector<8xf32>
    %160 = vector.multi_reduction <add>, %159, %cst_114 [1] : vector<8x512xf32> to vector<8xf32>
    %161 = vector.shape_cast %160 : vector<8xf32> to vector<8x1xf32>
    %cst_115 = arith.constant 0.001953125 : f32
    %162 = vector.broadcast %cst_115 : f32 to vector<8x1xf32>
    %163 = arith.mulf %161, %162 : vector<8x1xf32>
    %164 = arith.mulf %159, %159 : vector<8x512xf32>
    %cst_116 = arith.constant dense<0.000000e+00> : vector<8xf32>
    %165 = vector.multi_reduction <add>, %164, %cst_116 [1] : vector<8x512xf32> to vector<8xf32>
    %166 = vector.shape_cast %165 : vector<8xf32> to vector<8x1xf32>
    %cst_117 = arith.constant 0.001953125 : f32
    %167 = vector.broadcast %cst_117 : f32 to vector<8x1xf32>
    %168 = arith.mulf %166, %167 : vector<8x1xf32>
    %169 = arith.mulf %163, %163 : vector<8x1xf32>
    %170 = arith.subf %168, %169 : vector<8x1xf32>
    %c0_118 = arith.constant 0 : index
    %c0_119 = arith.constant 0 : index
    %171 = vector.load %arg7[%c0_118, %c0_119] : memref<8x1xf32, #tpu.memory_space<vmem>>, vector<8x1xf32>
    %cst_120 = arith.constant 9.99999974E-6 : f32
    %172 = vector.broadcast %cst_120 : f32 to vector<8x1xf32>
    %173 = arith.addf %170, %172 : vector<8x1xf32>
    %174 = math.rsqrt %173 : vector<8x1xf32>
    %175 = arith.mulf %171, %174 : vector<8x1xf32>
    %176 = vector.broadcast %175 : vector<8x1xf32> to vector<8x512xf32>
    %177 = arith.mulf %159, %176 : vector<8x512xf32>
    %c0_121 = arith.constant 0 : index
    %c0_122 = arith.constant 0 : index
    %178 = vector.load %arg8[%c0_121, %c0_122] : memref<8x1xf32, #tpu.memory_space<vmem>>, vector<8x1xf32>
    %179 = arith.mulf %163, %175 : vector<8x1xf32>
    %180 = arith.subf %178, %179 : vector<8x1xf32>
    %181 = vector.broadcast %180 : vector<8x1xf32> to vector<8x512xf32>
    %182 = arith.addf %177, %181 : vector<8x512xf32>
    %183 = arith.addf %182, %0 : vector<8x512xf32>
    %cst_123 = arith.constant 0.000000e+00 : f32
    %184 = vector.broadcast %cst_123 : f32 to vector<8x512xf32>
    %185 = arith.maximumf %183, %184 : vector<8x512xf32>
    %c0_124 = arith.constant 0 : index
    %c0_125 = arith.constant 0 : index
    %186 = vector.load %arg9[%c0_124, %c0_125] : memref<8x512xf32, #tpu.memory_space<vmem>>, vector<8x512xf32>
    tpu.vector_store %arg9[%c0_124, %c0_125], %185 {strides = array<i32>} : memref<8x512xf32, #tpu.memory_space<vmem>>, vector<8x512xf32>,
    return
  }
  func.func @transform_0(%arg0: i32) -> (i32, i32) {
    %c0_i32 = arith.constant 0 : i32
    %c0_i32_0 = arith.constant 0 : i32
    %c0_i32_1 = arith.constant 0 : i32
    return %c0_i32, %c0_i32_0 : i32, i32
  }
  func.func @transform_1(%arg0: i32) -> (i32, i32) {
    %c0_i32 = arith.constant 0 : i32
    %c0_i32_0 = arith.constant 0 : i32
    %c0_i32_1 = arith.constant 0 : i32
    return %c0_i32, %c0_i32_0 : i32, i32
  }
  func.func @transform_2(%arg0: i32) -> (i32, i32, i32) {
    %c0_i32 = arith.constant 0 : i32
    %c0_i32_0 = arith.constant 0 : i32
    %c0_i32_1 = arith.constant 0 : i32
    %c0_i32_2 = arith.constant 0 : i32
    return %c0_i32, %c0_i32_0, %c0_i32_1 : i32, i32, i32
  }
  func.func @transform_3(%arg0: i32) -> (i32, i32) {
    %c0_i32 = arith.constant 0 : i32
    %c0_i32_0 = arith.constant 0 : i32
    %c0_i32_1 = arith.constant 0 : i32
    return %c0_i32, %c0_i32_0 : i32, i32
  }
  func.func @transform_4(%arg0: i32) -> (i32, i32) {
    %c0_i32 = arith.constant 0 : i32
    %c0_i32_0 = arith.constant 0 : i32
    %c0_i32_1 = arith.constant 0 : i32
    return %c0_i32, %c0_i32_0 : i32, i32
  }
  func.func @transform_5(%arg0: i32) -> (i32, i32, i32) {
    %c0_i32 = arith.constant 0 : i32
    %c0_i32_0 = arith.constant 0 : i32
    %c0_i32_1 = arith.constant 0 : i32
    %c0_i32_2 = arith.constant 0 : i32
    return %c0_i32, %c0_i32_0, %c0_i32_1 : i32, i32, i32
  }
  func.func @transform_6(%arg0: i32) -> (i32, i32) {
    %c0_i32 = arith.constant 0 : i32
    %c0_i32_0 = arith.constant 0 : i32
    %c0_i32_1 = arith.constant 0 : i32
    return %c0_i32, %c0_i32_0 : i32, i32
  }
  func.func @transform_7(%arg0: i32) -> (i32, i32) {
    %c0_i32 = arith.constant 0 : i32
    %c0_i32_0 = arith.constant 0 : i32
    %c0_i32_1 = arith.constant 0 : i32
    return %c0_i32, %c0_i32_0 : i32, i32
  }
  func.func @transform_8(%arg0: i32) -> (i32, i32) {
    %c0_i32 = arith.constant 0 : i32
    %c0_i32_0 = arith.constant 0 : i32
    %c0_i32_1 = arith.constant 0 : i32
    return %c0_i32, %c0_i32_0 : i32, i32
  }
}

</mosaic_0001>

<bundles_post_ra>
// kernel: tpu_custom_call.1
= control target key start
LH: loop header
LB: loop body
LE: loop exit
PB: predicated region body
PF: predicated region fallthrough
CT: control target
= control target key end

     0   :  { %s3402_s9 = smov 16   ;;  %v4114_v3 = vmov 0.0   ;;  %s4105_s0 = inlined_call_operand.vmem [shape: f32[8,512], index: 0, kind: input, shape index: {}]   ;;  %s4106_s1 = inlined_call_operand.vmem [shape: f32[9,512], index: 1, kind: input, shape index: {}]   ;;  %s4107_s2 = inlined_call_operand.vmem [shape: f32[9,8,8], index: 2, kind: input, shape index: {}]   ;;  %s4108_s3 = inlined_call_operand.vmem [shape: f32[8,1], index: 3, kind: input, shape index: {}]   ;;  %s4109_s4 = inlined_call_operand.vmem [shape: f32[8,1], index: 4, kind: input, shape index: {}]   ;;  %s4110_s5 = inlined_call_operand.vmem [shape: f32[9,8,8], index: 5, kind: input, shape index: {}]   ;;  %s4111_s6 = inlined_call_operand.vmem [shape: f32[8,1], index: 6, kind: input, shape index: {}]   ;;  %s4112_s7 = inlined_call_operand.vmem [shape: f32[8,1], index: 7, kind: input, shape index: {}]   ;;  %s4113_s8 = inlined_call_operand.hbm [shape: f32[8,512], index: 8, kind: output, shape index: {}]  }
   0x1   :  { %v3461_v0 = vld [vmem:[%s4105_s0 + $0x18] sm:$0xff]  ;;  %v3466_v1 = vld [vmem:[%s4105_s0] sm:$0xff]  ;;  %v3475_v2 = vld [vmem:[%s4105_s0 + $0x8] sm:$0xff]  ;;  %186 = vmatprep.mubr.f32.mxu0 %v4114_v3  ;;  %257 = vmatprep.mubr.f32.mxu1 %v4114_v3 }
   0x2   :  { %82 = vrot.lane.b32.xlu1 %v3461_v0, %s3402_s9  ;;  %76 = vrot.lane.b32.xlu0 %v3466_v1, %s3402_s9 }
   0x3   :  { %13 = vsyncpa [#allocation3], 0  ;;  %s3404_s12 = smov 17   ;;  %v3486_v4 = vld [vmem:[%s4105_s0 + $0x10] sm:$0xff]  ;;  %s3405_s15 = smov 15   ;;  %v42_v5 = vlaneseq  ;;  %v3301_v27 = vld [vmem:[%s4107_s2 + $0x8] sm:$0xff] }
   0x4   :  { %s3406_s16 = smov 1   ;;  %s3407_s17 = smov 127   ;;  %v3300_v12 = vld [vmem:[%s4106_s1 + $0x1] ss:$8 sm:$0xf]  ;;  %vm118_vm2 = vcmask 64512  }
   0x5   :  { %s3408_s18 = smov 113   ;;  %s3409_s19 = smov 112   ;;  %v52_v6 = vshrl.u32 %v42_v5, 7  ;;  %v3544_v7 = vand.u32 127, %v42_v5  ;;  %v75_v49 = vld [vmem:[%s4107_s2] sm:$0xff] }
   0x6   :  { %34 = vrot.lane.b32.xlu1 %v3466_v1, %s3404_s12  ;;  %78 = vrot.lane.b32.xlu0 %v3475_v2, %s3402_s9  ;;  %s3410_s20 = smov 111   ;;  %v49_v16 = vld [vmem:[%s4106_s1] ss:$8 sm:$0xf] }
   0x7   :  { %v3546_v8 = vsub.s32 1, %v52_v6  ;;  %v3548_v9 = vsub.s32 0, %v52_v6  ;;  %vm84_vm0 = vcmp.lt.s32.totalorder %v3544_v7, 16  ;;  %v3557_v14 = vsub.s32 3, %v52_v6 }
   0x8   :  { %v3559_v15 = vsub.s32 2, %v52_v6  ;;  %vm44_vm1 = vcmp.lt.s32.totalorder %v3544_v7, 17  ;;  %v3306_v39 = vld [vmem:[%s4106_s1 + $0x2] ss:$8 sm:$0xf]  ;;  %vm417_vm3 = vcmp.lt.s32.totalorder %v3544_v7, 15 }
   0x9   :  { %v3555_v13 = vrot.slane %v3300_v12, %v3546_v8  ;;  %v3565_v17 = vrot.slane %v3300_v12, %v3548_v9  ;;  %v3574_v23 = vrot.slane %v49_v16, %v3546_v8  ;;  %v3577_v24 = vrot.slane %v3300_v12, %v3557_v14  ;;  %v3310_v57 = vld [vmem:[%s4106_s1 + $0x3] ss:$8 sm:$0xf] }
   0xa   :  { %80 = vrot.lane.b32.xlu1 %v3486_v4, %s3402_s9  ;;  %36 = vrot.lane.b32.xlu0 %v3475_v2, %s3404_s12  ;;  %v3580_v25 = vrot.slane %v3300_v12, %v3559_v15  ;;  %v3587_v30 = vrot.slane %v49_v16, %v3548_v9  ;;  %v3596_v34 = vrot.slane %v49_v16, %v3559_v15  ;;  %vm608_vm4 = vcmp.lt.s32.totalorder %v3544_v7, 1 }
   0xb   :  { %v3601_v37 = vrot.slane %v49_v16, %v3557_v14  ;;  %v3620_v48 = vrot.slane %v3306_v39, %v3546_v8  ;;  %v3630_v53 = vrot.slane %v3306_v39, %v3559_v15  ;;  %v3635_v55 = vrot.slane %v3306_v39, %v3548_v9 }
   0xc   :  { %v3638_v56 = vrot.slane %v3306_v39, %v3557_v14  ;;  %vm950_vm5 = vcmp.lt.s32.totalorder %v3544_v7, 127  ;;  %v3311_v39 = vld [vmem:[%s4107_s2 + $0x18] sm:$0xff]  ;;  %vm1141_vm6 = vcmp.lt.s32.totalorder %v3544_v7, 113  ;;  %vm1332_vm7 = vcmp.lt.s32.totalorder %v3544_v7, 112 }
   0xd   :  { %vm1523_vm8 = vcmp.lt.s32.totalorder %v3544_v7, 111 }
   0xe   :  { %38 = vrot.lane.b32.xlu1 %v3486_v4, %s3404_s12  ;;  %40 = vrot.lane.b32.xlu0 %v3461_v0, %s3404_s12 }
  0x12   :  { %411 = vrot.lane.b32.xlu1 %v3475_v2, %s3405_s15  ;;  %409 = vrot.lane.b32.xlu0 %v3466_v1, %s3405_s15 }
  0x16   :  { %413 = vrot.lane.b32.xlu1 %v3486_v4, %s3405_s15  ;;  %415 = vrot.lane.b32.xlu0 %v3461_v0, %s3405_s15 }
  0x1a   :  { %602 = vrot.lane.b32.xlu1 %v3475_v2, %s3406_s16  ;;  %600 = vrot.lane.b32.xlu0 %v3466_v1, %s3406_s16 }
  0x1e   :  { %604 = vrot.lane.b32.xlu1 %v3486_v4, %s3406_s16  ;;  %606 = vrot.lane.b32.xlu0 %v3461_v0, %s3406_s16 }
  0x22   :  { %946 = vrot.lane.b32.xlu1 %v3486_v4, %s3407_s17  ;;  %944 = vrot.lane.b32.xlu0 %v3475_v2, %s3407_s17 }
  0x26   :  { %948 = vrot.lane.b32.xlu1 %v3461_v0, %s3407_s17  ;;  %942 = vrot.lane.b32.xlu0 %v3466_v1, %s3407_s17 }
  0x2a   :  { %1137 = vrot.lane.b32.xlu1 %v3486_v4, %s3408_s18  ;;  %1135 = vrot.lane.b32.xlu0 %v3475_v2, %s3408_s18 }
  0x2e   :  { %1139 = vrot.lane.b32.xlu1 %v3461_v0, %s3408_s18  ;;  %1133 = vrot.lane.b32.xlu0 %v3466_v1, %s3408_s18 }
  0x32   :  { %1328 = vrot.lane.b32.xlu1 %v3486_v4, %s3409_s19  ;;  %1326 = vrot.lane.b32.xlu0 %v3475_v2, %s3409_s19 }
  0x36   :  { %1330 = vrot.lane.b32.xlu1 %v3461_v0, %s3409_s19  ;;  %1324 = vrot.lane.b32.xlu0 %v3466_v1, %s3409_s19 }
  0x3a   :  { %1519 = vrot.lane.b32.xlu1 %v3486_v4, %s3410_s20  ;;  %1517 = vrot.lane.b32.xlu0 %v3475_v2, %s3410_s20 }
  0x3e   :  { %1521 = vrot.lane.b32.xlu1 %v3461_v0, %s3410_s20  ;;  %1515 = vrot.lane.b32.xlu0 %v3466_v1, %s3410_s20 }
  0x74   :  { %v83_v10 = vpop.permute.xlu1 %82  ;;  %v77_v11 = vpop.permute.xlu0 %76 }
  0x75   :  { %v88_v18 = vsel %vm84_vm0, %v83_v10, %v77_v11 }
  0x76   :  { %v112_v26 = vmul.f32 %v3565_v17, %v88_v18 }
  0x78   :  { %v35_v19 = vpop.permute.xlu1 %34  ;;  %v79_v20 = vpop.permute.xlu0 %78 }
  0x79   :  { %v87_v21 = vsel %vm84_vm0, %v77_v11, %v79_v20  ;;  %v3307_v11 = vld [vmem:[%s4107_s2 + $0x10] sm:$0xff] }
  0x7a   :  { %v113_v22 = vmul.f32 %v3555_v13, %v87_v21  ;;  %v3670_v21 = vrot.slane %v3310_v57, %v3548_v9 }
  0x7c   :  { %v81_v28 = vpop.permute.xlu1 %80  ;;  %152 = vmatprep.subr.mxu0 %v113_v22  ;;  %v37_v29 = vpop.permute.xlu0 %36  ;;  %v3673_v22 = vrot.slane %v3310_v57, %v3557_v14 }
  0x7d   :  { %v86_v31 = vsel %vm84_vm0, %v79_v20, %v81_v28  ;;  %v47_v32 = vsel %vm44_vm1, %v35_v19, %v37_v29  ;;  %153 = vmatpush1.msra.mxu0 %v112_v26  ;;  %v85_v33 = vsel %vm84_vm0, %v81_v28, %v83_v10  ;;  %v3657_v10 = vrot.slane %v3310_v57, %v3546_v8  ;;  %v3317_v26 = vld [vmem:[%s4106_s1 + $0x5] ss:$8 sm:$0xf] }
  0x7e   :  { %v72_v35 = vmul.f32 %v3574_v23, %v47_v32  ;;  %v115_v36 = vmul.f32 %v3577_v24, %v85_v33  ;;  %v114_v38 = vmul.f32 %v3580_v25, %v86_v31  ;;  %3302 = vmatmul.mubr.msk.f32.vlgmr.msra.gmra.mxu0 %vm118_vm2, %v3301_v27 }
  0x7f   :  { %331 = vmatprep.mubr.f32.mxu0 %v4114_v3 }
  0x80   :  { %223 = vmatprep.subr.mxu1 %v115_v36  ;;  %v39_v40 = vpop.permute.xlu1 %38  ;;  %297 = vmatprep.subr.mxu0 %v72_v35  ;;  %v41_v41 = vpop.permute.xlu0 %40 }
  0x81   :  { %v46_v42 = vsel %vm44_vm1, %v37_v29, %v39_v40  ;;  %v45_v43 = vsel %vm44_vm1, %v39_v40, %v41_v41  ;;  %v48_v44 = vsel %vm44_vm1, %v41_v41, %v35_v19  ;;  %224 = vmatpush1.msra.mxu1 %v114_v38  ;;  %v3665_v19 = vrot.slane %v3310_v57, %v3559_v15 }
  0x82   :  { %v73_v45 = vmul.f32 %v3596_v34, %v46_v42  ;;  %v71_v46 = vmul.f32 %v3587_v30, %v48_v44  ;;  %v74_v47 = vmul.f32 %v3601_v37, %v45_v43  ;;  %3303 = vmatmul.mubr.msk.f32.vlgmr.msra.gmra.mxu1 %vm118_vm2, %v3301_v27  ;;  %v3692_v38 = vrot.slane %v3317_v26, %v3546_v8  ;;  %v3321_v44 = vld [vmem:[%s4106_s1 + $0x6] ss:$8 sm:$0xf] }
  0x83   :  { %402 = vmatprep.mubr.f32.mxu1 %v4114_v3  ;;  %v3701_v43 = vrot.slane %v3317_v26, %v3559_v15 }
  0x84   :  { %v412_v50 = vpop.permute.xlu1 %411  ;;  %298 = vmatpush1.msra.mxu0 %v71_v46  ;;  %368 = vmatprep.subr.mxu1 %v74_v47  ;;  %v410_v51 = vpop.permute.xlu0 %409  ;;  %v3710_v46 = vrot.slane %v3317_v26, %v3548_v9  ;;  %v3713_v47 = vrot.slane %v3317_v26, %v3557_v14 }
  0x85   :  { %v420_v52 = vsel %vm417_vm3, %v410_v51, %v412_v50  ;;  %369 = vmatpush1.msra.mxu1 %v73_v45  ;;  %3304 = vmatmul.mubr.msk.f32.vlgmr.msra.gmra.mxu0 %vm118_vm2, %v75_v49 }
  0x86   :  { %v446_v54 = vmul.f32 %v3620_v48, %v420_v52  ;;  %3305 = vmatmul.mubr.msk.f32.vlgmr.msra.gmra.mxu1 %vm118_vm2, %v75_v49  ;;  %518 = vmatprep.mubr.f32.mxu0 %v4114_v3  ;;  %v3314_v49 = vld [vmem:[%s4107_s2 + $0x20] sm:$0xff] }
  0x87   :  { %589 = vmatprep.mubr.f32.mxu1 %v4114_v3 }
  0x88   :  { %v414_v58 = vpop.permute.xlu1 %413  ;;  %484 = vmatprep.subr.mxu0 %v446_v54  ;;  %v416_v59 = vpop.permute.xlu0 %415 }
  0x89   :  { %v419_v60 = vsel %vm417_vm3, %v412_v50, %v414_v58  ;;  %v418_v61 = vsel %vm417_vm3, %v414_v58, %v416_v59  ;;  %v421_v62 = vsel %vm417_vm3, %v416_v59, %v410_v51  ;;  %v3318_v59 = vld [vmem:[%s4107_s2 + $0x28] sm:$0xff] }
  0x8a   :  { %v447_v63 = vmul.f32 %v3630_v53, %v419_v60  ;;  %v445_v5 = vmul.f32 %v3635_v55, %v421_v62  ;;  %v448_v6 = vmul.f32 %v3638_v56, %v418_v61  ;;  %v3746_v62 = vrot.slane %v3321_v44, %v3559_v15 }
  0x8c   :  { %v603_v12 = vpop.permute.xlu1 %602  ;;  %485 = vmatpush1.msra.mxu0 %v445_v5  ;;  %555 = vmatprep.subr.mxu1 %v448_v6  ;;  %v601_v16 = vpop.permute.xlu0 %600  ;;  %v3751_v5 = vrot.slane %v3321_v44, %v3548_v9  ;;  %v3754_v6 = vrot.slane %v3321_v44, %v3557_v14 }
  0x8d   :  { %v611_v18 = vsel %vm608_vm4, %v601_v16, %v603_v12  ;;  %556 = vmatpush1.msra.mxu1 %v447_v63  ;;  %3308 = vmatmul.mubr.msk.f32.vlgmr.msra.gmra.mxu0 %vm118_vm2, %v3307_v11 }
  0x8e   :  { %v637_v20 = vmul.f32 %v3657_v10, %v611_v18  ;;  %3309 = vmatmul.mubr.msk.f32.vlgmr.msra.gmra.mxu1 %vm118_vm2, %v3307_v11  ;;  %709 = vmatprep.mubr.f32.mxu0 %v4114_v3  ;;  %v3325_v11 = vld [vmem:[%s4106_s1 + $0x7] ss:$8 sm:$0xf] }
  0x8f   :  { %780 = vmatprep.mubr.f32.mxu1 %v4114_v3 }
  0x90   :  { %v605_v27 = vpop.permute.xlu1 %604  ;;  %675 = vmatprep.subr.mxu0 %v637_v20  ;;  %v607_v28 = vpop.permute.xlu0 %606 }
  0x91   :  { %v610_v29 = vsel %vm608_vm4, %v603_v12, %v605_v27  ;;  %v609_v31 = vsel %vm608_vm4, %v605_v27, %v607_v28  ;;  %v612_v32 = vsel %vm608_vm4, %v607_v28, %v601_v16 }
  0x92   :  { %v638_v33 = vmul.f32 %v3665_v19, %v610_v29  ;;  %v636_v35 = vmul.f32 %v3670_v21, %v612_v32  ;;  %v639_v36 = vmul.f32 %v3673_v22, %v609_v31  ;;  %v3773_v31 = vrot.slane %v3325_v11, %v3546_v8  ;;  %v3322_v32 = vld [vmem:[%s4107_s2 + $0x30] sm:$0xff] }
  0x94   :  { %v947_v40 = vpop.permute.xlu1 %946  ;;  %676 = vmatpush1.msra.mxu0 %v636_v35  ;;  %746 = vmatprep.subr.mxu1 %v639_v36  ;;  %v945_v41 = vpop.permute.xlu0 %944  ;;  %4124 = vst [vmem:[#allocation5_spill] sm:$0xff] %v3773_v31 }
  0x95   :  { %v952_v42 = vsel %vm950_vm5, %v945_v41, %v947_v40  ;;  %3312 = vmatmul.mubr.msk.f32.vlgmr.msra.gmra.mxu0 %vm118_vm2, %v3311_v39  ;;  %747 = vmatpush1.msra.mxu1 %v638_v33 }
  0x96   :  { %v979_v45 = vmul.f32 %v3692_v38, %v952_v42  ;;  %826 = vmatprep.subr.mxu0 %v3475_v2  ;;  %3313 = vmatmul.mubr.msk.f32.vlgmr.msra.gmra.mxu1 %vm118_vm2, %v3311_v39  ;;  %v3722_v2 = vrot.slane %v3321_v44, %v3546_v8  ;;  %v3782_v39 = vrot.slane %v3325_v11, %v3559_v15  ;;  %v3329_v44 = vld [vmem:[%s4106_s1 + $0x20] ss:$8 sm:$0xf] }
  0x97   :  { %827 = vmatpush1.msra.mxu0 %v3466_v1  ;;  %860 = vmatprep.mubr.f32.mxu0 %v4114_v3  ;;  %v3790_v42 = vrot.slane %v3325_v11, %v3557_v14 }
  0x98   :  { %v949_v50 = vpop.permute.xlu1 %948  ;;  %1017 = vmatprep.subr.mxu0 %v979_v45  ;;  %v943_v51 = vpop.permute.xlu0 %942  ;;  %897 = vmatprep.subr.mxu1 %v3461_v0  ;;  %4125 = vst [vmem:[#allocation6_spill] sm:$0xff] %v3782_v39 }
  0x99   :  { %v951_v52 = vsel %vm950_vm5, %v947_v40, %v949_v50  ;;  %v953_v54 = vsel %vm950_vm5, %v943_v51, %v945_v41  ;;  %v954_v57 = vsel %vm950_vm5, %v949_v50, %v943_v51  ;;  %3315 = vmatmul.mubr.msk.f32.vlgmr.msra.gmra.mxu0 %vm118_vm2, %v3314_v49  ;;  %898 = vmatpush1.msra.mxu1 %v3486_v4 }
  0x9a   :  { %v980_v1 = vmul.f32 %v3701_v43, %v951_v52  ;;  %v978_v0 = vmul.f32 %v3710_v46, %v953_v54  ;;  %v981_v58 = vmul.f32 %v3713_v47, %v954_v57  ;;  %931 = vmatprep.mubr.f32.mxu1 %v4114_v3  ;;  %1051 = vmatprep.mubr.f32.mxu0 %v4114_v3 }
  0x9b   :  { %3316 = vmatmul.mubr.msk.f32.vlgmr.msra.gmra.mxu1 %vm118_vm2, %v3314_v49  ;;  %v3787_v41 = vrot.slane %v3325_v11, %v3548_v9  ;;  %4127 = vst [vmem:[#allocation8_spill] sm:$0xff] %v3790_v42  ;;  %v3825_v11 = vrot.slane %v3329_v44, %v3557_v14 }
  0x9c   :  { %v1138_v60 = vpop.permute.xlu1 %1137  ;;  %1018 = vmatpush1.msra.mxu0 %v978_v0  ;;  %1088 = vmatprep.subr.mxu1 %v981_v58  ;;  %v1136_v4 = vpop.permute.xlu0 %1135  ;;  %v3808_v0 = vrot.slane %v3329_v44, %v3546_v8  ;;  %v3326_v58 = vld [vmem:[%s4107_s2 + $0x38] sm:$0xff] }
  0x9d   :  { %v1143_v61 = vsel %vm1141_vm6, %v1136_v4, %v1138_v60  ;;  %3319 = vmatmul.mubr.msk.f32.vlgmr.msra.gmra.mxu0 %vm118_vm2, %v3318_v59  ;;  %1089 = vmatpush1.msra.mxu1 %v980_v1  ;;  %4126 = vst [vmem:[#allocation7_spill] sm:$0xff] %v3787_v41  ;;  %4131 = vst [vmem:[#allocation12_spill] sm:$0xff] %v3825_v11 }
  0x9e   :  { %v1170_v63 = vmul.f32 %v3722_v2, %v1143_v61  ;;  %1122 = vmatprep.mubr.f32.mxu1 %v4114_v3  ;;  %1242 = vmatprep.mubr.f32.mxu0 %v4114_v3  ;;  %4128 = vst [vmem:[#allocation9_spill] sm:$0xff] %v3808_v0  ;;  %v3817_v61 = vrot.slane %v3329_v44, %v3559_v15 }
  0x9f   :  { %3320 = vmatmul.mubr.msk.f32.vlgmr.msra.gmra.mxu1 %vm118_vm2, %v3318_v59 }
  0xa0   :  { %v1140_v12 = vpop.permute.xlu1 %1139  ;;  %1208 = vmatprep.subr.mxu0 %v1170_v63  ;;  %v1134_v16 = vpop.permute.xlu0 %1133  ;;  %1313 = vmatprep.mubr.f32.mxu1 %v4114_v3  ;;  %4129 = vst [vmem:[#allocation10_spill] sm:$0xff] %v3817_v61  ;;  %v3822_v63 = vrot.slane %v3329_v44, %v3548_v9 }
  0xa1   :  { %v1142_v18 = vsel %vm1141_vm6, %v1138_v60, %v1140_v12  ;;  %v1144_v20 = vsel %vm1141_vm6, %v1134_v16, %v1136_v4  ;;  %v1145_v26 = vsel %vm1141_vm6, %v1140_v12, %v1134_v16 }
  0xa2   :  { %v1171_v27 = vmul.f32 %v3746_v62, %v1142_v18  ;;  %v1169_v28 = vmul.f32 %v3751_v5, %v1144_v20  ;;  %v1172_v29 = vmul.f32 %v3754_v6, %v1145_v26  ;;  %4130 = vst [vmem:[#allocation11_spill] sm:$0xff] %v3822_v63 }
  0xa4   :  { %v1329_v33 = vpop.permute.xlu1 %1328  ;;  %1209 = vmatpush1.msra.mxu0 %v1169_v28  ;;  %1279 = vmatprep.subr.mxu1 %v1172_v29  ;;  %v1327_v35 = vpop.permute.xlu0 %1326 }
  0xa5   :  { %v1334_v36 = vsel %vm1332_vm7, %v1327_v35, %v1329_v33  ;;  %3323 = vmatmul.mubr.msk.f32.vlgmr.msra.gmra.mxu0 %vm118_vm2, %v3322_v32  ;;  %1280 = vmatpush1.msra.mxu1 %v1171_v27  ;;  %v3330_v27 = vld [vmem:[%s4107_s2 + $0x40] sm:$0xff] }
  0xa6   :  { %v1361_v40 = vmul.f32 %v3773_v31, %v1334_v36  ;;  %3324 = vmatmul.mubr.msk.f32.vlgmr.msra.gmra.mxu1 %vm118_vm2, %v3322_v32  ;;  %1433 = vmatprep.mubr.f32.mxu0 %v4114_v3 }
  0xa7   :  { %1504 = vmatprep.mubr.f32.mxu1 %v4114_v3 }
  0xa8   :  { %v1331_v45 = vpop.permute.xlu1 %1330  ;;  %1399 = vmatprep.subr.mxu0 %v1361_v40  ;;  %v1325_v49 = vpop.permute.xlu0 %1324 }
  0xa9   :  { %v1333_v50 = vsel %vm1332_vm7, %v1329_v33, %v1331_v45  ;;  %v1335_v51 = vsel %vm1332_vm7, %v1325_v49, %v1327_v35  ;;  %v1336_v52 = vsel %vm1332_vm7, %v1331_v45, %v1325_v49 }
  0xaa   :  { %v1362_v54 = vmul.f32 %v3782_v39, %v1333_v50  ;;  %v1360_v57 = vmul.f32 %v3787_v41, %v1335_v51  ;;  %v1363_v1 = vmul.f32 %v3790_v42, %v1336_v52 }
  0xac   :  { %v1520_v59 = vpop.permute.xlu1 %1519  ;;  %1400 = vmatpush1.msra.mxu0 %v1360_v57  ;;  %1470 = vmatprep.subr.mxu1 %v1363_v1  ;;  %v1518_v60 = vpop.permute.xlu0 %1517 }
  0xad   :  { %v1525_v4 = vsel %vm1523_vm8, %v1518_v60, %v1520_v59  ;;  %3327 = vmatmul.mubr.msk.f32.vlgmr.msra.gmra.mxu0 %vm118_vm2, %v3326_v58  ;;  %1471 = vmatpush1.msra.mxu1 %v1362_v54 }
  0xae   :  { %v1552_v8 = vmul.f32 %v3808_v0, %v1525_v4  ;;  %3328 = vmatmul.mubr.msk.f32.vlgmr.msra.gmra.mxu1 %vm118_vm2, %v3326_v58  ;;  %1624 = vmatprep.mubr.f32.mxu0 %v4114_v3 }
  0xaf   :  { %1695 = vmatprep.mubr.f32.mxu1 %v4114_v3 }
  0xb0   :  { %v1522_v12 = vpop.permute.xlu1 %1521  ;;  %1590 = vmatprep.subr.mxu0 %v1552_v8  ;;  %v1516_v16 = vpop.permute.xlu0 %1515 }
  0xb1   :  { %v1524_v15 = vsel %vm1523_vm8, %v1520_v59, %v1522_v12  ;;  %v1526_v18 = vsel %vm1523_vm8, %v1516_v16, %v1518_v60  ;;  %v1527_v9 = vsel %vm1523_vm8, %v1522_v12, %v1516_v16 }
  0xb2   :  { %v1553_v20 = vmul.f32 %v3817_v61, %v1524_v15  ;;  %v1551_v14 = vmul.f32 %v3822_v63, %v1526_v18  ;;  %v1554_v26 = vmul.f32 %v3825_v11, %v1527_v9 }
  0xb4   :  { %1591 = vmatpush1.msra.mxu0 %v1551_v14  ;;  %1661 = vmatprep.subr.mxu1 %v1554_v26 }
  0xb5   :  { %3331 = vmatmul.mubr.msk.f32.vlgmr.msra.gmra.mxu0 %vm118_vm2, %v3330_v27  ;;  %1662 = vmatpush1.msra.mxu1 %v1553_v20 }
  0xb6   :  { %3332 = vmatmul.mubr.msk.f32.vlgmr.msra.gmra.mxu1 %vm118_vm2, %v3330_v27  ;;  %1855 = vmatprep.mubr.f32.mxu0 %v4114_v3 }
  0xb7   :  { %1926 = vmatprep.mubr.f32.mxu1 %v4114_v3 }
 0x13e   :  { %v188_v28 = vpop.f32.mrf.mxu0 }
 0x140   :  { %v190_v29 = vpop.f32.mrf.mxu0 }
 0x142   :  { %v259_v32 = vpop.f32.mrf.mxu1 }
 0x144   :  { %v261_v33 = vpop.f32.mrf.mxu1 }
 0x145   :  { %v333_v35 = vpop.f32.mrf.mxu0 }
 0x146   :  { %v404_v36 = vpop.f32.mrf.mxu1  ;;  %v334_v4 = vadd.f32 %v333_v35, %v188_v28 }
 0x147   :  { %v335_v40 = vpop.f32.mrf.mxu0  ;;  %v405_v12 = vadd.f32 %v404_v36, %v259_v32 }
 0x148   :  { %v406_v44 = vpop.f32.mrf.mxu1  ;;  %v336_v15 = vadd.f32 %v335_v40, %v190_v29 }
 0x149   :  { %v407_v18 = vadd.f32 %v406_v44, %v261_v33 }
 0x14d   :  { %v520_v45 = vpop.f32.mrf.mxu0 }
 0x14e   :  { %v591_v49 = vpop.f32.mrf.mxu1  ;;  %v596_v9 = vadd.f32 %v520_v45, %v334_v4 }
 0x14f   :  { %v522_v50 = vpop.f32.mrf.mxu0  ;;  %v598_v14 = vadd.f32 %v591_v49, %v405_v12 }
 0x150   :  { %v593_v51 = vpop.f32.mrf.mxu1  ;;  %v597_v27 = vadd.f32 %v522_v50, %v336_v15 }
 0x151   :  { %v599_v3 = vadd.f32 %v593_v51, %v407_v18 }
 0x155   :  { %v711_v52 = vpop.f32.mrf.mxu0 }
 0x156   :  { %v782_v54 = vpop.f32.mrf.mxu1  ;;  %v787_v11 = vadd.f32 %v711_v52, %v596_v9 }
 0x157   :  { %v713_v57 = vpop.f32.mrf.mxu0  ;;  %v789_v0 = vadd.f32 %v782_v54, %v598_v14 }
 0x158   :  { %v784_v1 = vpop.f32.mrf.mxu1  ;;  %v788_v39 = vadd.f32 %v713_v57, %v597_v27 }
 0x159   :  { %v862_v58 = vpop.f32.mrf.mxu0  ;;  %v790_v41 = vadd.f32 %v784_v1, %v599_v3 }
 0x15a   :  { %v938_v31 = vadd.f32 %v862_v58, %v787_v11 }
 0x15b   :  { %v933_v59 = vpop.f32.mrf.mxu1  ;;  %v864_v60 = vpop.f32.mrf.mxu0 }
 0x15c   :  { %v940_v35 = vadd.f32 %v933_v59, %v789_v0  ;;  %v939_v29 = vadd.f32 %v864_v60, %v788_v39 }
 0x15d   :  { %v935_v8 = vpop.f32.mrf.mxu1  ;;  %v1053_v16 = vpop.f32.mrf.mxu0 }
 0x15e   :  { %v941_v33 = vadd.f32 %v935_v8, %v790_v41  ;;  %v1129_v40 = vadd.f32 %v1053_v16, %v938_v31 }
 0x15f   :  { %v1124_v20 = vpop.f32.mrf.mxu1  ;;  %v1055_v26 = vpop.f32.mrf.mxu0 }
 0x160   :  { %v1130_v45 = vadd.f32 %v1055_v26, %v939_v29  ;;  %v1131_v49 = vadd.f32 %v1124_v20, %v940_v35 }
 0x161   :  { %v1126_v61 = vpop.f32.mrf.mxu1 }
 0x162   :  { %v1132_v52 = vadd.f32 %v1126_v61, %v941_v33 }
 0x165   :  { %v1244_v63 = vpop.f32.mrf.mxu0 }
 0x166   :  { %v1315_v42 = vpop.f32.mrf.mxu1  ;;  %v1320_v50 = vadd.f32 %v1244_v63, %v1129_v40 }
 0x167   :  { %v1246_v28 = vpop.f32.mrf.mxu0  ;;  %v1322_v4 = vadd.f32 %v1315_v42, %v1131_v49 }
 0x168   :  { %v1317_v32 = vpop.f32.mrf.mxu1  ;;  %v1321_v12 = vadd.f32 %v1246_v28, %v1130_v45  ;;  %v3411_v28 = vmov 0   ;;  %v1724_v45 = vld [vmem:[%s4108_s3] sm:$0xff] }
 0x169   :  { %v1323_v3 = vadd.f32 %v1317_v32, %v1132_v52  ;;  %3370 = vset.pattern.permute.xlu0 %v3411_v28  ;;  %3371 = vset.pattern.permute.xlu1 %v3411_v28 }
 0x16d   :  { %v1435_v36 = vpop.f32.mrf.mxu0 }
 0x16e   :  { %v1506_v44 = vpop.f32.mrf.mxu1  ;;  %v1511_v54 = vadd.f32 %v1435_v36, %v1320_v50 }
 0x16f   :  { %v1437_v51 = vpop.f32.mrf.mxu0  ;;  %v1513_v11 = vadd.f32 %v1506_v44, %v1322_v4 }
 0x170   :  { %v1508_v15 = vpop.f32.mrf.mxu1  ;;  %v1512_v1 = vadd.f32 %v1437_v51, %v1321_v12  ;;  %v1737_v51 = vld [vmem:[%s4109_s4] sm:$0xff] }
 0x171   :  { %v1514_v39 = vadd.f32 %v1508_v15, %v1323_v3 }
 0x175   :  { %v1626_v57 = vpop.f32.mrf.mxu0 }
 0x176   :  { %v1702_v0 = vadd.f32 %v1626_v57, %v1511_v54  ;;  %v1697_v58 = vpop.f32.mrf.mxu1 }
 0x177   :  { %v1628_v59 = vpop.f32.mrf.mxu0  ;;  %v1704_v41 = vadd.f32 %v1697_v58, %v1513_v11 }
 0x178   :  { %v1703_v31 = vadd.f32 %v1628_v59, %v1512_v1  ;;  %v1699_v60 = vpop.f32.mrf.mxu1  ;;  %v1712_v8 = vmul.f32 %v1702_v0, %v1702_v0 }
 0x179   :  { %v1705_v18 = vadd.f32 %v1699_v60, %v1514_v39  ;;  %v1714_v61 = vmul.f32 %v1704_v41, %v1704_v41 }
 0x17a   :  { %v1706_v16 = vadd.f32 %v1703_v31, %v1702_v0  ;;  %v1713_v63 = vmul.f32 %v1703_v31, %v1703_v31 }
 0x17b   :  { %v1715_v14 = vmul.f32 %v1705_v18, %v1705_v18 }
 0x17c   :  { %v1707_v42 = vadd.f32 %v1706_v16, %v1704_v41  ;;  %v1716_v9 = vadd.f32 %v1713_v63, %v1712_v8 }
 0x17e   :  { %v1708_v20 = vadd.f32 %v1707_v42, %v1705_v18  ;;  %v1717_v26 = vadd.f32 %v1716_v9, %v1714_v61 }
 0x180   :  { %1709 = vadd.xlane.f32.xlu0 %v1708_v20  ;;  %v1718_v27 = vadd.f32 %v1717_v26, %v1715_v14 }
 0x182   :  { %1719 = vadd.xlane.f32.xlu1 %v1718_v27  ;;  %v3333_v27 = vld [vmem:[%s4110_s5 + $0x8] sm:$0xff] }
 0x209   :  { %v1710_v35 = vpop.xlane.xlu0 %1709 }
 0x20a   :  { %v1711_v32 = vmul.f32 0.001953125, %v1710_v35 }
 0x20b   :  { %v1720_v36 = vpop.xlane.xlu1 %1719 }
 0x20c   :  { %v1722_v29 = vmul.f32 %v1711_v32, %v1711_v32  ;;  %v1721_v33 = vmul.f32 0.001953125, %v1720_v36 }
 0x20e   :  { %v1723_v40 = vsub.f32 %v1721_v33, %v1722_v29 }
 0x210   :  { %v1725_v44 = vadd.f32 1e-05, %v1723_v40 }
 0x212   :  { %3372 = vrsqrt.f32 %v1725_v44  ;;  %v1769_v44 = vld [vmem:[%s4110_s5] sm:$0xff] }
 0x21f   :  { %v3373_v49 = vpop.eup %3372 }
 0x220   :  { %v1727_v50 = vmul.f32 %v3373_v49, %v1724_v45 }
 0x222   :  { %1730 = vperm.xlu0 %3370, %v1727_v50   ;;  %v1738_v52 = vmul.f32 %v1727_v50, %v1711_v32  ;;  %v4132_v32 = vmov 0.0  }
 0x224   :  { %v1739_v4 = vsub.f32 %v1737_v51, %v1738_v52 }
 0x226   :  { %1742 = vperm.xlu1 %3371, %v1739_v4  }
 0x29d   :  { %v1731_v12 = vpop.permute.xlu0 %1730 }
 0x29e   :  { %v1733_v54 = vmul.f32 %v1731_v12, %v1702_v0  ;;  %v1736_v15 = vmul.f32 %v1731_v12, %v1705_v18  ;;  %v1734_v3 = vmul.f32 %v1731_v12, %v1703_v31  ;;  %v1735_v0 = vmul.f32 %v1731_v12, %v1704_v41 }
 0x2a1   :  { %v1743_v57 = vpop.permute.xlu1 %1742 }
 0x2a2   :  { %v1745_v11 = vadd.f32 %v1743_v57, %v1733_v54  ;;  %v1748_v1 = vadd.f32 %v1743_v57, %v1736_v15  ;;  %v1746_v58 = vadd.f32 %v1743_v57, %v1734_v3  ;;  %v1747_v31 = vadd.f32 %v1743_v57, %v1735_v0 }
 0x2a4   :  { %v3851_v59 = vmax.f32 %v1745_v11, 0.0  ;;  %v3853_v39 = vmax.f32 %v1748_v1, 0.0  ;;  %v3859_v60 = vmax.f32 %v1746_v58, 0.0  ;;  %v3877_v8 = vmax.f32 %v1747_v31, 0.0 }
 0x2a6   :  { %1759 = vrot.lane.b32.xlu0 %v3853_v39, %s3404_s12  ;;  %1770 = vrot.lane.b32.xlu1 %v3851_v59, %s3402_s9 }
 0x2aa   :  { %2078 = vrot.lane.b32.xlu0 %v3851_v59, %s3405_s15  ;;  %1772 = vrot.lane.b32.xlu1 %v3859_v60, %s3402_s9 }
 0x2ae   :  { %2084 = vrot.lane.b32.xlu0 %v3853_v39, %s3405_s15  ;;  %1776 = vrot.lane.b32.xlu1 %v3853_v39, %s3402_s9 }
 0x2b2   :  { %2245 = vrot.lane.b32.xlu0 %v3851_v59, %s3406_s16  ;;  %1753 = vrot.lane.b32.xlu1 %v3851_v59, %s3404_s12 }
 0x2b6   :  { %2251 = vrot.lane.b32.xlu0 %v3853_v39, %s3406_s16  ;;  %1755 = vrot.lane.b32.xlu1 %v3859_v60, %s3404_s12 }
 0x2ba   :  { %2565 = vrot.lane.b32.xlu0 %v3859_v60, %s3407_s17  ;;  %1774 = vrot.lane.b32.xlu1 %v3877_v8, %s3402_s9 }
 0x2be   :  { %2563 = vrot.lane.b32.xlu0 %v3851_v59, %s3407_s17  ;;  %1757 = vrot.lane.b32.xlu1 %v3877_v8, %s3404_s12 }
 0x2c2   :  { %2732 = vrot.lane.b32.xlu0 %v3859_v60, %s3408_s18  ;;  %2080 = vrot.lane.b32.xlu1 %v3859_v60, %s3405_s15 }
 0x2c6   :  { %2730 = vrot.lane.b32.xlu0 %v3851_v59, %s3408_s18  ;;  %2082 = vrot.lane.b32.xlu1 %v3877_v8, %s3405_s15 }
 0x2ca   :  { %2899 = vrot.lane.b32.xlu0 %v3859_v60, %s3409_s19  ;;  %2247 = vrot.lane.b32.xlu1 %v3859_v60, %s3406_s16 }
 0x2ce   :  { %2897 = vrot.lane.b32.xlu0 %v3851_v59, %s3409_s19  ;;  %2249 = vrot.lane.b32.xlu1 %v3877_v8, %s3406_s16 }
 0x2d2   :  { %3066 = vrot.lane.b32.xlu0 %v3859_v60, %s3410_s20  ;;  %2567 = vrot.lane.b32.xlu1 %v3877_v8, %s3407_s17 }
 0x2d6   :  { %3064 = vrot.lane.b32.xlu0 %v3851_v59, %s3410_s20  ;;  %2569 = vrot.lane.b32.xlu1 %v3853_v39, %s3407_s17 }
 0x2da   :  { %2734 = vrot.lane.b32.xlu1 %v3877_v8, %s3408_s18 }
 0x2de   :  { %2736 = vrot.lane.b32.xlu1 %v3853_v39, %s3408_s18 }
 0x2e2   :  { %2901 = vrot.lane.b32.xlu1 %v3877_v8, %s3409_s19 }
 0x2e6   :  { %2903 = vrot.lane.b32.xlu1 %v3853_v39, %s3409_s19 }
 0x2ea   :  { %3068 = vrot.lane.b32.xlu1 %v3877_v8, %s3410_s20 }
 0x2ee   :  { %3070 = vrot.lane.b32.xlu1 %v3853_v39, %s3410_s20 }
 0x318   :  { %v1760_v41 = vpop.permute.xlu0 %1759  ;;  %v1771_v16 = vpop.permute.xlu1 %1770 }
 0x31c   :  { %v2079_v63 = vpop.permute.xlu0 %2078  ;;  %v1773_v18 = vpop.permute.xlu1 %1772 }
 0x31d   :  { %v1780_v61 = vsel %vm84_vm0, %v1771_v16, %v1773_v18 }
 0x31e   :  { %v1783_v42 = vmul.f32 %v1780_v61, %v3555_v13 }
 0x320   :  { %v2085_v9 = vpop.permute.xlu0 %2084  ;;  %1821 = vmatprep.subr.mxu0 %v1783_v42  ;;  %v1777_v20 = vpop.permute.xlu1 %1776 }
 0x321   :  { %v1781_v14 = vsel %vm84_vm0, %v1777_v20, %v1771_v16 }
 0x322   :  { %v1782_v26 = vmul.f32 %v1781_v14, %v3565_v17 }
 0x324   :  { %v2246_v28 = vpop.permute.xlu0 %2245  ;;  %1822 = vmatpush1.msra.mxu0 %v1782_v26  ;;  %v1754_v35 = vpop.permute.xlu1 %1753 }
 0x325   :  { %3334 = vmatmul.mubr.msk.f32.vlgmr.msra.gmra.mxu0 %vm118_vm2, %v3333_v27  ;;  %v1764_v13 = vsel %vm44_vm1, %v1760_v41, %v1754_v35 }
 0x326   :  { %2000 = vmatprep.mubr.f32.mxu0 %v4132_v32  ;;  %v1765_v40 = vmul.f32 %v1764_v13, %v3587_v30 }
 0x328   :  { %v1756_v36 = vpop.permute.xlu1 %1755  ;;  %v2252_v29 = vpop.permute.xlu0 %2251 }
 0x329   :  { %v1763_v33 = vsel %vm44_vm1, %v1754_v35, %v1756_v36  ;;  %v3347_v35 = vld [vmem:[%s4110_s5 + $0x28] sm:$0xff] }
 0x32a   :  { %v1766_v17 = vmul.f32 %v1763_v33, %v3574_v23 }
 0x32c   :  { %1966 = vmatprep.subr.mxu0 %v1766_v17  ;;  %v1775_v45 = vpop.permute.xlu1 %1774  ;;  %v2566_v23 = vpop.permute.xlu0 %2565  ;;  %v3350_v17 = vld [vmem:[%s4110_s5 + $0x30] sm:$0xff] }
 0x32d   :  { %v1778_v49 = vsel %vm84_vm0, %v1775_v45, %v1777_v20  ;;  %v1779_v50 = vsel %vm84_vm0, %v1773_v18, %v1775_v45  ;;  %1967 = vmatpush1.msra.mxu0 %v1765_v40 }
 0x32e   :  { %v1784_v51 = vmul.f32 %v1779_v50, %v3580_v25  ;;  %v1785_v52 = vmul.f32 %v1778_v49, %v3577_v24  ;;  %3336 = vmatmul.mubr.msk.f32.vlgmr.msra.gmra.mxu0 %vm118_vm2, %v1769_v44  ;;  %v2089_v24 = vsel %vm417_vm3, %v2085_v9, %v2079_v63 }
 0x32f   :  { %2163 = vmatprep.mubr.f32.mxu0 %v4132_v32 }
 0x330   :  { %1892 = vmatprep.subr.mxu1 %v1785_v52  ;;  %v1758_v30 = vpop.permute.xlu1 %1757  ;;  %v2564_v57 = vpop.permute.xlu0 %2563 }
 0x331   :  { %v1761_v4 = vsel %vm44_vm1, %v1758_v30, %v1760_v41  ;;  %v1762_v12 = vsel %vm44_vm1, %v1756_v36, %v1758_v30  ;;  %1893 = vmatpush1.msra.mxu1 %v1784_v51  ;;  %v2256_v41 = vsel %vm608_vm4, %v2252_v29, %v2246_v28  ;;  %v2573_v14 = vsel %vm950_vm5, %v2564_v57, %v2566_v23 }
 0x332   :  { %v1767_v54 = vmul.f32 %v1762_v12, %v3596_v34  ;;  %v1768_v25 = vmul.f32 %v1761_v4, %v3601_v37  ;;  %3335 = vmatmul.mubr.msk.f32.vlgmr.msra.gmra.mxu1 %vm118_vm2, %v3333_v27  ;;  %v2090_v34 = vmul.f32 %v2089_v24, %v3635_v55  ;;  %v3338_v37 = vld [vmem:[%s4110_s5 + $0x10] sm:$0xff]  ;;  %v3344_v27 = vld [vmem:[%s4110_s5 + $0x20] sm:$0xff]  ;;  %v3353_v4 = vld [vmem:[%s4110_s5 + $0x38] sm:$0xff] }
 0x333   :  { %2071 = vmatprep.mubr.f32.mxu1 %v4132_v32 }
 0x334   :  { %2037 = vmatprep.subr.mxu1 %v1768_v25  ;;  %v2081_v15 = vpop.permute.xlu1 %2080  ;;  %v2733_v55 = vpop.permute.xlu0 %2732 }
 0x335   :  { %v2088_v3 = vsel %vm417_vm3, %v2079_v63, %v2081_v15  ;;  %2038 = vmatpush1.msra.mxu1 %v1767_v54 }
 0x336   :  { %v2091_v11 = vmul.f32 %v2088_v3, %v3620_v48  ;;  %3337 = vmatmul.mubr.msk.f32.vlgmr.msra.gmra.mxu1 %vm118_vm2, %v1769_v44  ;;  %v4136_v3 = vld [vmem:[#allocation8_spill] sm:$0xff] }
 0x337   :  { %2234 = vmatprep.mubr.f32.mxu1 %v4132_v32 }
 0x338   :  { %2129 = vmatprep.subr.mxu0 %v2091_v11  ;;  %v2083_v1 = vpop.permute.xlu1 %2082  ;;  %v2731_v42 = vpop.permute.xlu0 %2730 }
 0x339   :  { %v2086_v58 = vsel %vm417_vm3, %v2083_v1, %v2085_v9  ;;  %v2087_v0 = vsel %vm417_vm3, %v2081_v15, %v2083_v1  ;;  %2130 = vmatpush1.msra.mxu0 %v2090_v34  ;;  %v2740_v13 = vsel %vm1141_vm6, %v2731_v42, %v2733_v55  ;;  %v4135_v15 = vld [vmem:[#allocation6_spill] sm:$0xff] }
 0x33a   :  { %v2092_v48 = vmul.f32 %v2087_v0, %v3630_v53  ;;  %v2093_v31 = vmul.f32 %v2086_v58, %v3638_v56  ;;  %3339 = vmatmul.mubr.msk.f32.vlgmr.msra.gmra.mxu0 %vm118_vm2, %v3338_v37  ;;  %v2257_v53 = vmul.f32 %v2256_v41, %v3670_v21  ;;  %v3341_v56 = vld [vmem:[%s4110_s5 + $0x18] sm:$0xff]  ;;  %v4137_v58 = vld [vmem:[#allocation9_spill] sm:$0xff] }
 0x33b   :  { %2330 = vmatprep.mubr.f32.mxu0 %v4132_v32 }
 0x33c   :  { %2200 = vmatprep.subr.mxu1 %v2093_v31  ;;  %v2248_v16 = vpop.permute.xlu1 %2247 }
 0x33d   :  { %v2255_v63 = vsel %vm608_vm4, %v2246_v28, %v2248_v16  ;;  %2201 = vmatpush1.msra.mxu1 %v2092_v48  ;;  %v4138_v48 = vld [vmem:[#allocation11_spill] sm:$0xff] }
 0x33e   :  { %v2258_v18 = vmul.f32 %v2255_v63, %v3657_v10  ;;  %3340 = vmatmul.mubr.msk.f32.vlgmr.msra.gmra.mxu1 %vm118_vm2, %v3338_v37 }
 0x33f   :  { %2401 = vmatprep.mubr.f32.mxu1 %v4132_v32 }
 0x340   :  { %2296 = vmatprep.subr.mxu0 %v2258_v18  ;;  %v2250_v61 = vpop.permute.xlu1 %2249  ;;  %v4139_v18 = vld [vmem:[#allocation10_spill] sm:$0xff] }
 0x341   :  { %v2253_v9 = vsel %vm608_vm4, %v2250_v61, %v2252_v29  ;;  %v2254_v20 = vsel %vm608_vm4, %v2248_v16, %v2250_v61  ;;  %2297 = vmatpush1.msra.mxu0 %v2257_v53 }
 0x342   :  { %v2259_v10 = vmul.f32 %v2254_v20, %v3665_v19  ;;  %v2260_v21 = vmul.f32 %v2253_v9, %v3673_v22  ;;  %2447 = vmatprep.subr.mxu0 %v3859_v60  ;;  %3342 = vmatmul.mubr.msk.f32.vlgmr.msra.gmra.mxu0 %vm118_vm2, %v3341_v56  ;;  %v2900_v60 = vpop.permute.xlu0 %2899 }
 0x343   :  { %2448 = vmatpush1.msra.mxu0 %v3851_v59  ;;  %2481 = vmatprep.mubr.f32.mxu0 %v4132_v32  ;;  %v2575_v59 = vmul.f32 %v2573_v14, %v3710_v46 }
 0x344   :  { %2367 = vmatprep.subr.mxu1 %v2260_v21  ;;  %v2568_v26 = vpop.permute.xlu1 %2567 }
 0x345   :  { %v2572_v19 = vsel %vm950_vm5, %v2566_v23, %v2568_v26  ;;  %2368 = vmatpush1.msra.mxu1 %v2259_v10  ;;  %v4133_v23 = vld [vmem:[#allocation5_spill] sm:$0xff] }
 0x346   :  { %v2576_v22 = vmul.f32 %v2572_v19, %v3692_v38  ;;  %2518 = vmatprep.subr.mxu1 %v3853_v39  ;;  %3343 = vmatmul.mubr.msk.f32.vlgmr.msra.gmra.mxu1 %vm118_vm2, %v3341_v56  ;;  %v2898_v29 = vpop.permute.xlu0 %2897  ;;  %v4140_v56 = vld [vmem:[#allocation12_spill] sm:$0xff] }
 0x347   :  { %3345 = vmatmul.mubr.msk.f32.vlgmr.msra.gmra.mxu0 %vm118_vm2, %v3344_v27  ;;  %2519 = vmatpush1.msra.mxu1 %v3877_v8  ;;  %v2907_v50 = vsel %vm1332_vm7, %v2898_v29, %v2900_v60 }
 0x348   :  { %2614 = vmatprep.subr.mxu0 %v2576_v22  ;;  %v2570_v28 = vpop.permute.xlu1 %2569  ;;  %2552 = vmatprep.mubr.f32.mxu1 %v4132_v32 }
 0x349   :  { %v2571_v38 = vsel %vm950_vm5, %v2568_v26, %v2570_v28  ;;  %v2574_v39 = vsel %vm950_vm5, %v2570_v28, %v2564_v57  ;;  %2615 = vmatpush1.msra.mxu0 %v2575_v59  ;;  %2648 = vmatprep.mubr.f32.mxu0 %v4132_v32 }
 0x34a   :  { %v2577_v46 = vmul.f32 %v2571_v38, %v3701_v43  ;;  %v2578_v8 = vmul.f32 %v2574_v39, %v3713_v47  ;;  %3346 = vmatmul.mubr.msk.f32.vlgmr.msra.gmra.mxu1 %vm118_vm2, %v3344_v27  ;;  %v2742_v47 = vmul.f32 %v2740_v13, %v3751_v5  ;;  %v3067_v5 = vpop.permute.xlu0 %3066 }
 0x34b   :  { %3348 = vmatmul.mubr.msk.f32.vlgmr.msra.gmra.mxu0 %vm118_vm2, %v3347_v35  ;;  %2719 = vmatprep.mubr.f32.mxu1 %v4132_v32 }
 0x34c   :  { %2685 = vmatprep.subr.mxu1 %v2578_v8  ;;  %v2735_v36 = vpop.permute.xlu1 %2734  ;;  %2815 = vmatprep.mubr.f32.mxu0 %v4132_v32 }
 0x34d   :  { %v2739_v33 = vsel %vm1141_vm6, %v2733_v55, %v2735_v36  ;;  %2686 = vmatpush1.msra.mxu1 %v2577_v46  ;;  %v3356_v55 = vld [vmem:[%s4110_s5 + $0x40] sm:$0xff] }
 0x34e   :  { %v2743_v43 = vmul.f32 %v2739_v33, %v3722_v2  ;;  %3349 = vmatmul.mubr.msk.f32.vlgmr.msra.gmra.mxu1 %vm118_vm2, %v3347_v35  ;;  %v3065_v54 = vpop.permute.xlu0 %3064 }
 0x34f   :  { %2886 = vmatprep.mubr.f32.mxu1 %v4132_v32  ;;  %v3074_v34 = vsel %vm1523_vm8, %v3065_v54, %v3067_v5 }
 0x350   :  { %2781 = vmatprep.subr.mxu0 %v2743_v43  ;;  %v2737_v40 = vpop.permute.xlu1 %2736  ;;  %v3076_v31 = vmul.f32 %v3074_v34, %v4138_v48 }
 0x351   :  { %v2738_v44 = vsel %vm1141_vm6, %v2735_v36, %v2737_v40  ;;  %v2741_v45 = vsel %vm1141_vm6, %v2737_v40, %v2731_v42  ;;  %2782 = vmatpush1.msra.mxu0 %v2742_v47 }
 0x352   :  { %v2744_v2 = vmul.f32 %v2738_v44, %v3746_v62  ;;  %v2745_v49 = vmul.f32 %v2741_v45, %v3754_v6  ;;  %3351 = vmatmul.mubr.msk.f32.vlgmr.msra.gmra.mxu0 %vm118_vm2, %v3350_v17  ;;  %v4134_v62 = vld [vmem:[#allocation7_spill] sm:$0xff] }
 0x353   :  { %2982 = vmatprep.mubr.f32.mxu0 %v4132_v32  ;;  %v2909_v6 = vmul.f32 %v2907_v50, %v4134_v62 }
 0x354   :  { %2852 = vmatprep.subr.mxu1 %v2745_v49  ;;  %v2902_v51 = vpop.permute.xlu1 %2901 }
 0x355   :  { %v2906_v52 = vsel %vm1332_vm7, %v2900_v60, %v2902_v51  ;;  %2853 = vmatpush1.msra.mxu1 %v2744_v2 }
 0x356   :  { %v2910_v30 = vmul.f32 %v2906_v52, %v4133_v23  ;;  %3352 = vmatmul.mubr.msk.f32.vlgmr.msra.gmra.mxu1 %vm118_vm2, %v3350_v17 }
 0x357   :  { %3053 = vmatprep.mubr.f32.mxu1 %v4132_v32 }
 0x358   :  { %2948 = vmatprep.subr.mxu0 %v2910_v30  ;;  %v2904_v12 = vpop.permute.xlu1 %2903 }
 0x359   :  { %v2905_v25 = vsel %vm1332_vm7, %v2902_v51, %v2904_v12  ;;  %v2908_v24 = vsel %vm1332_vm7, %v2904_v12, %v2898_v29  ;;  %2949 = vmatpush1.msra.mxu0 %v2909_v6 }
 0x35a   :  { %v2911_v57 = vmul.f32 %v2905_v25, %v4135_v15  ;;  %v2912_v11 = vmul.f32 %v2908_v24, %v4136_v3  ;;  %3354 = vmatmul.mubr.msk.f32.vlgmr.msra.gmra.mxu0 %vm118_vm2, %v3353_v4 }
 0x35b   :  { %3149 = vmatprep.mubr.f32.mxu0 %v4132_v32 }
 0x35c   :  { %3019 = vmatprep.subr.mxu1 %v2912_v11  ;;  %v3069_v37 = vpop.permute.xlu1 %3068 }
 0x35d   :  { %v3073_v1 = vsel %vm1523_vm8, %v3067_v5, %v3069_v37  ;;  %3020 = vmatpush1.msra.mxu1 %v2911_v57 }
 0x35e   :  { %v3077_v0 = vmul.f32 %v3073_v1, %v4137_v58  ;;  %3355 = vmatmul.mubr.msk.f32.vlgmr.msra.gmra.mxu1 %vm118_vm2, %v3353_v4 }
 0x35f   :  { %3220 = vmatprep.mubr.f32.mxu1 %v4132_v32 }
 0x360   :  { %3115 = vmatprep.subr.mxu0 %v3077_v0  ;;  %v3071_v41 = vpop.permute.xlu1 %3070 }
 0x361   :  { %v3072_v16 = vsel %vm1523_vm8, %v3069_v37, %v3071_v41  ;;  %v3075_v63 = vsel %vm1523_vm8, %v3071_v41, %v3065_v54  ;;  %3116 = vmatpush1.msra.mxu0 %v3076_v31 }
 0x362   :  { %v3078_v53 = vmul.f32 %v3072_v16, %v4139_v18  ;;  %v3079_v61 = vmul.f32 %v3075_v63, %v4140_v56  ;;  %3357 = vmatmul.mubr.msk.f32.vlgmr.msra.gmra.mxu0 %vm118_vm2, %v3356_v55 }
 0x364   :  { %3186 = vmatprep.subr.mxu1 %v3079_v61 }
 0x365   :  { %3187 = vmatpush1.msra.mxu1 %v3078_v53 }
 0x366   :  { %3358 = vmatmul.mubr.msk.f32.vlgmr.msra.gmra.mxu1 %vm118_vm2, %v3356_v55 }
 0x3e5   :  { %v1857_v32 = vpop.f32.mrf.mxu0 }
 0x3e7   :  { %v1859_v42 = vpop.f32.mrf.mxu0 }
 0x3ee   :  { %v2002_v20 = vpop.f32.mrf.mxu0 }
 0x3ef   :  { %v2003_v8 = vadd.f32 %v2002_v20, %v1857_v32 }
 0x3f0   :  { %v2004_v21 = vpop.f32.mrf.mxu0 }
 0x3f1   :  { %v2005_v29 = vadd.f32 %v2004_v21, %v1859_v42 }
 0x3f2   :  { %v1928_v9 = vpop.f32.mrf.mxu1 }
 0x3f4   :  { %v1930_v10 = vpop.f32.mrf.mxu1 }
 0x3f6   :  { %v2073_v14 = vpop.f32.mrf.mxu1 }
 0x3f7   :  { %v2074_v33 = vadd.f32 %v2073_v14, %v1928_v9 }
 0x3f8   :  { %v2075_v26 = vpop.f32.mrf.mxu1 }
 0x3f9   :  { %v2076_v17 = vadd.f32 %v2075_v26, %v1930_v10 }
 0x3fa   :  { %v2165_v7 = vpop.f32.mrf.mxu0 }
 0x3fb   :  { %v2241_v43 = vadd.f32 %v2165_v7, %v2003_v8 }
 0x3fc   :  { %v2167_v27 = vpop.f32.mrf.mxu0 }
 0x3fd   :  { %v2242_v44 = vadd.f32 %v2167_v27, %v2005_v29 }
 0x3fe   :  { %v2236_v19 = vpop.f32.mrf.mxu1 }
 0x3ff   :  { %v2243_v45 = vadd.f32 %v2236_v19, %v2074_v33 }
 0x400   :  { %v2238_v59 = vpop.f32.mrf.mxu1 }
 0x401   :  { %v2244_v50 = vadd.f32 %v2238_v59, %v2076_v17 }
 0x402   :  { %v2332_v22 = vpop.f32.mrf.mxu0 }
 0x403   :  { %v2408_v2 = vadd.f32 %v2332_v22, %v2241_v43  ;;  %v3262_v43 = vld [vmem:[%s4112_s7] sm:$0xff] }
 0x404   :  { %v2334_v60 = vpop.f32.mrf.mxu0 }
 0x405   :  { %v2409_v51 = vadd.f32 %v2334_v60, %v2242_v44 }
 0x406   :  { %v2403_v28 = vpop.f32.mrf.mxu1 }
 0x407   :  { %v2483_v35 = vpop.f32.mrf.mxu0  ;;  %v2410_v52 = vadd.f32 %v2403_v28, %v2243_v45 }
 0x408   :  { %v2405_v38 = vpop.f32.mrf.mxu1  ;;  %v2559_v23 = vadd.f32 %v2483_v35, %v2408_v2 }
 0x409   :  { %v2485_v46 = vpop.f32.mrf.mxu0  ;;  %v2411_v6 = vadd.f32 %v2405_v38, %v2244_v50 }
 0x40a   :  { %v2554_v39 = vpop.f32.mrf.mxu1  ;;  %v2560_v12 = vadd.f32 %v2485_v46, %v2409_v51 }
 0x40b   :  { %v2650_v36 = vpop.f32.mrf.mxu0  ;;  %v2561_v54 = vadd.f32 %v2554_v39, %v2410_v52 }
 0x40c   :  { %v2556_v13 = vpop.f32.mrf.mxu1  ;;  %v2726_v25 = vadd.f32 %v2650_v36, %v2559_v23  ;;  %v3249_v36 = vld [vmem:[%s4111_s6] sm:$0xff]  ;;  %s3412_s6 = smov [#allocation2]  }
 0x40d   :  { %v2652_v40 = vpop.f32.mrf.mxu0  ;;  %v2562_v11 = vadd.f32 %v2556_v13, %v2411_v6  ;;  %s3292_s25 = sshll.u32 %s3412_s6, 4  ;;  %v3377_v6 = vld [vmem:[%s4105_s0 + $0x8] sm:$0xff]  ;;  %s3293_s25 = int_to_ptr.vmem [resolvable:$true] %s3292_s25 }
 0x40e   :  { %v2721_v47 = vpop.f32.mrf.mxu1  ;;  %v2727_v15 = vadd.f32 %v2652_v40, %v2560_v12  ;;  %v3378_v12 = vld [vmem:[%s4105_s0 + $0x10] sm:$0xff]  ;;  %s3380_s12 = scalar_lea.vmem %s3293_s25, 512  ;;  %p3385_p1 = scmp.lt.s32.totalorder %s3293_s25, %s3293_s25 }
 0x40f   :  { %v2728_v37 = vadd.f32 %v2721_v47, %v2561_v54  ;;  %p3381_p0 = scmp.ne.s32.totalorder %s3293_s25, %s3380_s12  ;;  %p3386_p2 = scmp.lt.s32.totalorder %s3380_s12, %s3380_s12 }
 0x410   :  { %v2723_v5 = vpop.f32.mrf.mxu1 }
 0x411   :  { %v2729_v0 = vadd.f32 %v2723_v5, %v2562_v11  ;;  %p3387_p3 = por %p3386_p2, %p3385_p1 }
 0x412   :  { %v2817_v49 = vpop.f32.mrf.mxu0 }
 0x413   :  { %v2893_v57 = vadd.f32 %v2817_v49, %v2726_v25  ;;  %v3379_v25 = vld [vmem:[%s4105_s0 + $0x18] sm:$0xff]  ;;  %p3388_p4 = pnand %p3387_p3, %p3381_p0 }
 0x414   :  { %v2819_v62 = vpop.f32.mrf.mxu0 }
 0x415   :  { %v2894_v1 = vadd.f32 %v2819_v62, %v2727_v15 }
 0x416   :  { %v2888_v30 = vpop.f32.mrf.mxu1 }
 0x417   :  { %v2895_v31 = vadd.f32 %v2888_v30, %v2728_v37  ;;  %v3376_v30 = vld [vmem:[%s4105_s0] sm:$0xff] }
 0x418   :  { %v2890_v24 = vpop.f32.mrf.mxu1 }
 0x419   :  { %v2896_v63 = vadd.f32 %v2890_v24, %v2729_v0 }
 0x41a   :  { %v2984_v4 = vpop.f32.mrf.mxu0 }
 0x41b   :  { %v3060_v58 = vadd.f32 %v2984_v4, %v2893_v57 }
 0x41c   :  { %v2986_v34 = vpop.f32.mrf.mxu0 }
 0x41d   :  { %v3061_v55 = vadd.f32 %v2986_v34, %v2894_v1 }
 0x41e   :  { %v3055_v3 = vpop.f32.mrf.mxu1 }
 0x41f   :  { %v3062_v53 = vadd.f32 %v3055_v3, %v2895_v31 }
 0x420   :  { %v3057_v41 = vpop.f32.mrf.mxu1 }
 0x421   :  { %v3063_v61 = vadd.f32 %v3057_v41, %v2896_v63 }
 0x422   :  { %v3151_v48 = vpop.f32.mrf.mxu0 }
 0x423   :  { %v3227_v16 = vadd.f32 %v3151_v48, %v3060_v58 }
 0x424   :  { %v3153_v18 = vpop.f32.mrf.mxu0 }
 0x425   :  { %v3228_v56 = vadd.f32 %v3153_v18, %v3061_v55  ;;  %v3237_v42 = vmul.f32 %v3227_v16, %v3227_v16 }
 0x426   :  { %v3222_v32 = vpop.f32.mrf.mxu1 }
 0x427   :  { %v3231_v9 = vadd.f32 %v3228_v56, %v3227_v16  ;;  %v3238_v20 = vmul.f32 %v3228_v56, %v3228_v56  ;;  %v3229_v10 = vadd.f32 %v3222_v32, %v3062_v53 }
 0x428   :  { %v3224_v21 = vpop.f32.mrf.mxu1 }
 0x429   :  { %v3239_v14 = vmul.f32 %v3229_v10, %v3229_v10  ;;  %v3230_v7 = vadd.f32 %v3224_v21, %v3063_v61  ;;  %v3232_v26 = vadd.f32 %v3231_v9, %v3229_v10  ;;  %v3241_v27 = vadd.f32 %v3238_v20, %v3237_v42 }
 0x42b   :  { %v3233_v19 = vadd.f32 %v3232_v26, %v3230_v7  ;;  %v3240_v22 = vmul.f32 %v3230_v7, %v3230_v7  ;;  %v3242_v59 = vadd.f32 %v3241_v27, %v3239_v14 }
 0x42d   :  { %3234 = vadd.xlane.f32.xlu0 %v3233_v19  ;;  %v3243_v60 = vadd.f32 %v3242_v59, %v3240_v22 }
 0x42f   :  { %3244 = vadd.xlane.f32.xlu1 %v3243_v60 }
 0x4b6   :  { %v3235_v28 = vpop.xlane.xlu0 %3234 }
 0x4b7   :  { %v3236_v35 = vmul.f32 0.001953125, %v3235_v28 }
 0x4b8   :  { %v3245_v38 = vpop.xlane.xlu1 %3244 }
 0x4b9   :  { %v3247_v39 = vmul.f32 %v3236_v35, %v3236_v35  ;;  %v3246_v46 = vmul.f32 0.001953125, %v3245_v38 }
 0x4bb   :  { %v3248_v8 = vsub.f32 %v3246_v46, %v3247_v39 }
 0x4bd   :  { %v3250_v13 = vadd.f32 1e-05, %v3248_v8 }
 0x4bf   :  { %3374 = vrsqrt.f32 %v3250_v13 }
 0x4cc   :  { %v3375_v29 = vpop.eup %3374 }
 0x4cd   :  { %v3252_v33 = vmul.f32 %v3375_v29, %v3249_v36 }
 0x4cf   :  { %3255 = vperm.xlu0 %3370, %v3252_v33   ;;  %v3263_v47 = vmul.f32 %v3252_v33, %v3236_v35 }
 0x4d1   :  { %v3264_v17 = vsub.f32 %v3262_v43, %v3263_v47 }
 0x4d3   :  { %3267 = vperm.xlu1 %3371, %v3264_v17  }
 0x54a   :  { %v3256_v40 = vpop.permute.xlu0 %3255 }
 0x54b   :  { %v3258_v44 = vmul.f32 %v3256_v40, %v3227_v16  ;;  %v3259_v45 = vmul.f32 %v3256_v40, %v3228_v56  ;;  %v3260_v2 = vmul.f32 %v3256_v40, %v3229_v10  ;;  %v3261_v49 = vmul.f32 %v3256_v40, %v3230_v7 }
 0x54e   :  { %v3268_v5 = vpop.permute.xlu1 %3267 }
 0x54f   :  { %v3270_v50 = vadd.f32 %v3268_v5, %v3258_v44  ;;  %v3271_v51 = vadd.f32 %v3268_v5, %v3259_v45  ;;  %v3272_v52 = vadd.f32 %v3268_v5, %v3260_v2  ;;  %v3273_v23 = vadd.f32 %v3268_v5, %v3261_v49 }
 0x551   :  { %v3274_v62 = vadd.f32 %v3376_v30, %v3270_v50  ;;  %v3275_v4 = vadd.f32 %v3377_v6, %v3271_v51  ;;  %v3276_v54 = vadd.f32 %v3378_v12, %v3272_v52  ;;  %v3277_v24 = vadd.f32 %v3379_v25, %v3273_v23 }
 0x553   :  { %v3278_v15 = vmax.f32 %v3274_v62, 0.0  ;;  %v3279_v57 = vmax.f32 %v3275_v4, 0.0  ;;  %v3280_v3 = vmax.f32 %v3276_v54, 0.0  ;;  %v3281_v11 = vmax.f32 %v3277_v24, 0.0 }
 0x555   :  { %3282 = vst [vmem:[#allocation2] sm:$0xff] %v3278_v15  ;;  %3283 = vst [vmem:[#allocation2 + $0x8] sm:$0xff] %v3279_v57 }
 0x556   :  { %3284 = vst [vmem:[#allocation2 + $0x10] sm:$0xff] %v3280_v3  ;;  %3285 = vst [vmem:[#allocation2 + $0x18] sm:$0xff] %v3281_v11 }
 0x557   :  { %3391 = shalt.err (!%p3388_p4)
}
 0x558   :  { %3295 = dma.vmem_to_hbm [thread:$0]  %s3293_s25, 512, %s4113_s8, [#allocation3]  }
 0x559   :  { %3400 = dma.done.wait [#allocation3], 512  }
 0x55a   :  { %3401 = vsyncadd [#allocation3], 4294966784 }
 0x55b   :  { %3299 = vsyncpa [#allocation3], 1 }

</bundles_post_ra>
